<compile_context>
chip_gen: v5e
topology: v5e:2x2
jax: 0.10.0
libtpu: 0.0.40
codegen_flags: <defaults>
</compile_context>

<pallas_src>
import jax
import jax.numpy as jnp
from jax.experimental import pallas as pl
from jax.experimental.pallas import tpu as pltpu

HIDDEN = 768


def filtration_gate_kernel(text_ref, mm_ref,
                           wr_ref, br_ref,
                           vt_ref, vm_ref, c_ref,
                           out_ref):
    # (tm, H) f32 row tiles of the flattened (B*S, H) inputs.
    text = text_ref[...]
    mm = mm_ref[...]

    # Folded gate: sigma( text . vt + mm . vm + c ), exact f32 (XLU lane reduce).
    gate_logit = (jnp.sum(text * vt_ref[...], axis=-1, keepdims=True)
                  + jnp.sum(mm * vm_ref[...], axis=-1, keepdims=True)
                  + c_ref[0])
    gate = jax.nn.sigmoid(gate_logit)                      # (tm, 1)

    # reserved = gate * tanh(resv_linear(multimodal));  bf16 MXU, f32 accumulate.
    resv = jnp.tanh(
        jnp.dot(mm.astype(jnp.bfloat16), wr_ref[...],
                preferred_element_type=jnp.float32)
        + br_ref[...])

    # output = cat([text, reserved], -1) -> (tm, 2H); both halves 128-aligned.
    out_ref[:, :HIDDEN] = text
    out_ref[:, HIDDEN:] = gate * resv


def _round_up8(x):
    return max(8, ((x + 7) // 8) * 8)


def _pick_row_tile(m, cap=1024, min_per_core=256):
    """Row tile: largest tile up to `cap`; only split the grid when each step
    still gets >= min_per_core rows (avoids the tiny-tile / per-step-overhead
    cliff for small M, while allowing megacore sharding for large M)."""
    m8 = _round_up8(m)
    if m8 <= 2 * min_per_core:
        return m8                      # single tile covers everything
    tm = min(cap, (m8 + 1) // 2)       # at least 2 grid steps
    return _round_up8(tm)


def prepare_kernel_params(params):
    """Fold text_linear / multimodal_linear / gate_linear into two 768-vectors
    plus a scalar (f32), and cast the remaining matmul weight to bf16 once."""
    wt, wm, bm, wr, br, wg, bg = params
    wg_t = wg[:HIDDEN]                                  # gate half acting on t_proj
    wg_m = wg[HIDDEN:]                                  # gate half acting on m_proj
    vt = (wt @ wg_t).reshape(1, HIDDEN).astype(jnp.float32)
    vm = (wm @ wg_m).reshape(1, HIDDEN).astype(jnp.float32)
    c = (bm @ wg_m + bg).reshape(1).astype(jnp.float32)  # scalar, lives in SMEM
    return (wr.astype(jnp.bfloat16),                    # resv weight, (in, out) bf16
            br.reshape(1, HIDDEN).astype(jnp.float32),
            vt, vm, c)


def filtration_gate_forward(text_features, multimodal_features, kparams, *, tm=None):
    """text_features, multimodal_features: (B, S, 768) f32 -> (B, S, 1536) f32."""
    B, S, H = text_features.shape
    assert H == HIDDEN
    M = B * S
    if tm is None:
        tm = _pick_row_tile(M)
    n_steps = pl.cdiv(M, tm)
    M_pad = n_steps * tm

    text2d = text_features.reshape(M, H)
    mm2d = multimodal_features.reshape(M, H)
    if M_pad != M:
        pad = M_pad - M
        text2d = jnp.pad(text2d, ((0, pad), (0, 0)))
        mm2d = jnp.pad(mm2d, ((0, pad), (0, 0)))

    wr_bf, br, vt, vm, c = kparams

    row_in = pl.BlockSpec((tm, H), lambda i: (i, 0))
    row_out = pl.BlockSpec((tm, 2 * H), lambda i: (i, 0))
    single = pl.Buffered(1)  # grid-invariant operands: no dead second buffer
    w_spec = pl.BlockSpec((H, H), lambda i: (0, 0), pipeline_mode=single)
    b_spec = pl.BlockSpec((1, H), lambda i: (0, 0), pipeline_mode=single)
    c_spec = pl.BlockSpec(memory_space=pltpu.MemorySpace.SMEM)  # scalar in SMEM

    out2d = pl.pallas_call(
        filtration_gate_kernel,
        out_shape=jax.ShapeDtypeStruct((M_pad, 2 * H), jnp.float32),
        grid=(n_steps,),
        in_specs=[row_in, row_in,        # text, multimodal row tiles
                  w_spec, b_spec,        # Wr (bf16), br
                  b_spec, b_spec,        # vt, vm (folded gate vectors)
                  c_spec],               # folded gate constant (SMEM scalar)
        out_specs=row_out,
        compiler_params=pltpu.CompilerParams(
            dimension_semantics=("parallel",),
            vmem_limit_bytes=40 * 1024 * 1024),
    )(text2d, mm2d, wr_bf, br, vt, vm, c)

    return out2d[:M].reshape(B, S, 2 * H)


def init_params(key):
    """Deterministic synthetic parameters matching the nn.Linear shapes.
    Matmul weights are stored transposed (in, out): y = x @ W (+ b)."""
    k = jax.random.split(key, 7)
    scale = 0.02
    wt = scale * jax.random.normal(k[0], (HIDDEN, HIDDEN), jnp.float32)   # text_linear, no bias
    wm = scale * jax.random.normal(k[1], (HIDDEN, HIDDEN), jnp.float32)   # multimodal_linear
    bm = scale * jax.random.normal(k[2], (HIDDEN,), jnp.float32)
    wr = scale * jax.random.normal(k[3], (HIDDEN, HIDDEN), jnp.float32)   # resv_linear
    br = scale * jax.random.normal(k[4], (HIDDEN,), jnp.float32)
    wg = scale * jax.random.normal(k[5], (2 * HIDDEN,), jnp.float32)      # gate_linear (1536 -> 1)
    bg = scale * jax.random.normal(k[6], (1,), jnp.float32)
    return (wt, wm, bm, wr, br, wg, bg)


def filtration_gate_reference(text, mm, params):
    """Pure-JAX f32 reference of the PyTorch forward (no folding)."""
    wt, wm, bm, wr, br, wg, bg = params
    t_proj = text @ wt
    m_proj = mm @ wm + bm
    concat = jnp.concatenate([t_proj, m_proj], axis=-1)
    gate = jax.nn.sigmoid(concat @ wg + bg)[..., None]
    reserved = gate * jnp.tanh(mm @ wr + br)
    return jnp.concatenate([text, reserved], axis=-1)


if __name__ == "__main__":
    key = jax.random.PRNGKey(0)
    kp, kt, km = jax.random.split(key, 3)

    B, S = 2, 8  # small batch/seq; hidden fixed at 768 by the module weights
    text = jax.random.normal(kt, (B, S, HIDDEN), jnp.float32)
    multimodal = jax.random.normal(km, (B, S, HIDDEN), jnp.float32)

    params = init_params(kp)
    kparams = prepare_kernel_params(params)   # fold + one-time bf16 cast

    out = filtration_gate_forward(text, multimodal, kparams)
    out = jax.block_until_ready(out)

    ref = filtration_gate_reference(text, multimodal, params)
    assert out.shape == (B, S, 2 * HIDDEN)
    # Gate path is exact f32; only the resv matmul uses bf16 operands (f32 acc).
    assert jnp.allclose(out, ref, atol=2e-2, rtol=2e-2), float(jnp.max(jnp.abs(out - ref)))

    print("KERNEL_OK")
</pallas_src>

<mosaic_0001>
module attributes {stable_mosaic.version = 11 : i64} {
  func.func @filtration_gate_kernel(%arg0: i32, %arg1: memref<16x768xf32, #tpu.memory_space<vmem>>, %arg2: memref<16x768xf32, #tpu.memory_space<vmem>>, %arg3: memref<768x768xbf16, #tpu.memory_space<vmem>>, %arg4: memref<1x768xf32, #tpu.memory_space<vmem>>, %arg5: memref<1x768xf32, #tpu.memory_space<vmem>>, %arg6: memref<1x768xf32, #tpu.memory_space<vmem>>, %arg7: memref<1xf32, #tpu.memory_space<smem>>, %arg8: memref<16x1536xf32, #tpu.memory_space<vmem>>) attributes {dimension_semantics = [#tpu.dimension_semantics<parallel>], iteration_bounds = array<i64: 1>, scalar_prefetch = 0 : i64, scratch_operands = 0 : i64, tpu.core_type = #tpu.core_type<tc>, window_params = [{transform_indices = @transform_0, window_bounds = array<i64: 16, 768>}, {transform_indices = @transform_1, window_bounds = array<i64: 16, 768>}, {pipeline_mode = #tpu.pipeline_mode<synchronous>, transform_indices = @transform_2, window_bounds = array<i64: 768, 768>}, {pipeline_mode = #tpu.pipeline_mode<synchronous>, transform_indices = @transform_3, window_bounds = array<i64: 1, 768>}, {pipeline_mode = #tpu.pipeline_mode<synchronous>, transform_indices = @transform_4, window_bounds = array<i64: 1, 768>}, {pipeline_mode = #tpu.pipeline_mode<synchronous>, transform_indices = @transform_5, window_bounds = array<i64: 1, 768>}, {transform_indices = @transform_6, window_bounds = array<i64: 1>}, {transform_indices = @transform_7, window_bounds = array<i64: 16, 1536>}]} {
    %c0 = arith.constant 0 : index
    %c0_0 = arith.constant 0 : index
    %0 = vector.load %arg1[%c0, %c0_0] : memref<16x768xf32, #tpu.memory_space<vmem>>, vector<16x768xf32>
    %c0_1 = arith.constant 0 : index
    %c0_2 = arith.constant 0 : index
    %1 = vector.load %arg2[%c0_1, %c0_2] : memref<16x768xf32, #tpu.memory_space<vmem>>, vector<16x768xf32>
    %c0_3 = arith.constant 0 : index
    %c0_4 = arith.constant 0 : index
    %2 = vector.load %arg5[%c0_3, %c0_4] : memref<1x768xf32, #tpu.memory_space<vmem>>, vector<1x768xf32>
    %3 = vector.broadcast %2 : vector<1x768xf32> to vector<16x768xf32>
    %4 = arith.mulf %0, %3 : vector<16x768xf32>
    %cst = arith.constant dense<0.000000e+00> : vector<16xf32>
    %5 = vector.multi_reduction <add>, %4, %cst [1] : vector<16x768xf32> to vector<16xf32>
    %6 = vector.shape_cast %5 : vector<16xf32> to vector<16x1xf32>
    %c0_5 = arith.constant 0 : index
    %c0_6 = arith.constant 0 : index
    %7 = vector.load %arg6[%c0_5, %c0_6] : memref<1x768xf32, #tpu.memory_space<vmem>>, vector<1x768xf32>
    %8 = vector.broadcast %7 : vector<1x768xf32> to vector<16x768xf32>
    %9 = arith.mulf %1, %8 : vector<16x768xf32>
    %cst_7 = arith.constant dense<0.000000e+00> : vector<16xf32>
    %10 = vector.multi_reduction <add>, %9, %cst_7 [1] : vector<16x768xf32> to vector<16xf32>
    %11 = vector.shape_cast %10 : vector<16xf32> to vector<16x1xf32>
    %12 = arith.addf %6, %11 : vector<16x1xf32>
    %c0_8 = arith.constant 0 : index
    %13 = memref.load %arg7[%c0_8] : memref<1xf32, #tpu.memory_space<smem>>
    %14 = vector.broadcast %13 : f32 to vector<16x1xf32>
    %15 = arith.addf %12, %14 : vector<16x1xf32>
    %16 = arith.negf %15 : vector<16x1xf32>
    %17 = math.exp %16 : vector<16x1xf32>
    %cst_9 = arith.constant 1.000000e+00 : f32
    %18 = vector.broadcast %cst_9 : f32 to vector<16x1xf32>
    %19 = arith.addf %18, %17 : vector<16x1xf32>
    %20 = arith.divf %18, %19 : vector<16x1xf32>
    %21 = arith.truncf %1 : vector<16x768xf32> to vector<16x768xbf16>
    %c0_10 = arith.constant 0 : index
    %c0_11 = arith.constant 0 : index
    %22 = vector.load %arg3[%c0_10, %c0_11] : memref<768x768xbf16, #tpu.memory_space<vmem>>, vector<768x768xbf16>
    %cst_12 = arith.constant dense<0.000000e+00> : vector<16x768xf32>
    %23 = tpu.matmul %21, %22, %cst_12 {dimension_numbers = #tpu.dot_dimension_numbers<[1], [0], [0], [1], [0, 0, 1, 1], [], []>} : vector<16x768xbf16>, vector<768x768xbf16>, vector<16x768xf32> -> vector<16x768xf32>
    %c0_13 = arith.constant 0 : index
    %c0_14 = arith.constant 0 : index
    %24 = vector.load %arg4[%c0_13, %c0_14] : memref<1x768xf32, #tpu.memory_space<vmem>>, vector<1x768xf32>
    %25 = vector.broadcast %24 : vector<1x768xf32> to vector<16x768xf32>
    %26 = arith.addf %23, %25 : vector<16x768xf32>
    %27 = math.tanh %26 : vector<16x768xf32>
    %c0_15 = arith.constant 0 : index
    %c0_16 = arith.constant 0 : index
    %28 = vector.load %arg8[%c0_15, %c0_16] : memref<16x1536xf32, #tpu.memory_space<vmem>>, vector<16x768xf32>
    tpu.vector_store %arg8[%c0_15, %c0_16], %0 {strides = array<i32>} : memref<16x1536xf32, #tpu.memory_space<vmem>>, vector<16x768xf32>,
    %29 = vector.broadcast %20 : vector<16x1xf32> to vector<16x768xf32>
    %30 = arith.mulf %29, %27 : vector<16x768xf32>
    %c0_17 = arith.constant 0 : index
    %c768 = arith.constant 768 : index
    %31 = vector.load %arg8[%c0_17, %c768] : memref<16x1536xf32, #tpu.memory_space<vmem>>, vector<16x768xf32>
    tpu.vector_store %arg8[%c0_17, %c768], %30 {strides = array<i32>} : memref<16x1536xf32, #tpu.memory_space<vmem>>, vector<16x768xf32>,
    return
  }
  func.func @transform_0(%arg0: i32) -> (i32, i32) {
    %c0_i32 = arith.constant 0 : i32
    %c0_i32_0 = arith.constant 0 : i32
    return %arg0, %c0_i32 : i32, i32
  }
  func.func @transform_1(%arg0: i32) -> (i32, i32) {
    %c0_i32 = arith.constant 0 : i32
    %c0_i32_0 = arith.constant 0 : i32
    return %arg0, %c0_i32 : i32, i32
  }
  func.func @transform_2(%arg0: i32) -> (i32, i32) {
    %c0_i32 = arith.constant 0 : i32
    %c0_i32_0 = arith.constant 0 : i32
    %c0_i32_1 = arith.constant 0 : i32
    return %c0_i32, %c0_i32_0 : i32, i32
  }
  func.func @transform_3(%arg0: i32) -> (i32, i32) {
    %c0_i32 = arith.constant 0 : i32
    %c0_i32_0 = arith.constant 0 : i32
    %c0_i32_1 = arith.constant 0 : i32
    return %c0_i32, %c0_i32_0 : i32, i32
  }
  func.func @transform_4(%arg0: i32) -> (i32, i32) {
    %c0_i32 = arith.constant 0 : i32
    %c0_i32_0 = arith.constant 0 : i32
    %c0_i32_1 = arith.constant 0 : i32
    return %c0_i32, %c0_i32_0 : i32, i32
  }
  func.func @transform_5(%arg0: i32) -> (i32, i32) {
    %c0_i32 = arith.constant 0 : i32
    %c0_i32_0 = arith.constant 0 : i32
    %c0_i32_1 = arith.constant 0 : i32
    return %c0_i32, %c0_i32_0 : i32, i32
  }
  func.func @transform_6(%arg0: i32) -> i32 {
    %c0_i32 = arith.constant 0 : i32
    %c0_i32_0 = arith.constant 0 : i32
    return %c0_i32 : i32
  }
  func.func @transform_7(%arg0: i32) -> (i32, i32) {
    %c0_i32 = arith.constant 0 : i32
    %c0_i32_0 = arith.constant 0 : i32
    return %arg0, %c0_i32 : i32, i32
  }
}

</mosaic_0001>

<bundles_post_ra>
// kernel: tpu_custom_call.1
= control target key start
LH: loop header
LB: loop body
LE: loop exit
PB: predicated region body
PF: predicated region fallthrough
CT: control target
= control target key end

     0   :  { %13 = vsyncpa [#allocation4], 0  ;;  %s4698_s0 = inlined_call_operand.hbm [shape: f32[16,768], index: 0, kind: input, shape index: {}]   ;;  %s4699_s1 = inlined_call_operand.hbm [shape: f32[16,768], index: 1, kind: input, shape index: {}]   ;;  %s4700_s2 = inlined_call_operand.hbm [shape: bf16[768,768], index: 2, kind: input, shape index: {}]   ;;  %s4701_s3 = inlined_call_operand.hbm [shape: f32[1,768], index: 3, kind: input, shape index: {}]   ;;  %s4702_s4 = inlined_call_operand.hbm [shape: f32[1,768], index: 4, kind: input, shape index: {}]   ;;  %s4703_s5 = inlined_call_operand.hbm [shape: f32[1,768], index: 5, kind: input, shape index: {}]   ;;  %s4704_s6 = inlined_call_operand.<no memory space> [shape: f32[1], index: 6, kind: input, shape index: {}]   ;;  %s4705_s7 = inlined_call_operand.hbm [shape: f32[16,1536], index: 7, kind: output, shape index: {}]  }
   0x1   :  { %14 = vsyncpa [#allocation7], 0 }
   0x2   :  { %15 = vsyncpa [#allocation10], 0 }
   0x3   :  { %16 = vsyncpa [#allocation13], 0 }
   0x4   :  { %17 = vsyncpa [#allocation5], 0  ;;  %s35_s26 = sshll.u32 %s4699_s1, 4  ;;  %s4252_s27 = smov [#allocation6]   ;;  %s36_s26 = int_to_ptr.hbm [resolvable:$true] %s35_s26 }
   0x5   :  { %s37_s28 = sshll.u32 %s4252_s27, 4  ;;  %s62_s8 = sshll.u32 %s4701_s3, 4  ;;  %s38_s28 = int_to_ptr.vmem [resolvable:$true] %s37_s28  ;;  %s63_s8 = int_to_ptr.hbm [resolvable:$true] %s62_s8 }
   0x6   :  { %s4253_s9 = smov 768   ;;  %s4254_s10 = smov 48  }
   0x7   :  { %43 = dma.hbm_to_vmem [thread:$0]  %s36_s26, 1536, %s38_s28, [#allocation7], %s4253_s9, %s4253_s9, %s4254_s10  }
   0x8   :  { %s4255_s11 = smov [#allocation9]   ;;  %s22_s15 = sshll.u32 %s4698_s0, 4  ;;  %s23_s15 = int_to_ptr.hbm [resolvable:$true] %s22_s15 }
   0x9   :  { %s64_s12 = sshll.u32 %s4255_s11, 4  ;;  %s48_s17 = sshll.u32 %s4700_s2, 4  ;;  %s65_s12 = int_to_ptr.vmem [resolvable:$true] %s64_s12  ;;  %s49_s17 = int_to_ptr.hbm [resolvable:$true] %s48_s17 }
   0xa   :  { %67 = dma.hbm_to_vmem [thread:$0]  %s63_s8, 96, %s65_s12, [#allocation10]  }
   0xb   :  { %s4256_s18 = smov [#allocation3]   ;;  %s4257_s3 = smov [#allocation8]  }
   0xc   :  { %s24_s19 = sshll.u32 %s4256_s18, 4  ;;  %s50_s20 = sshll.u32 %s4257_s3, 4  ;;  %s25_s19 = int_to_ptr.vmem [resolvable:$true] %s24_s19  ;;  %s51_s20 = int_to_ptr.vmem [resolvable:$true] %s50_s20 }
   0xd   :  { %30 = dma.hbm_to_vmem [thread:$0]  %s23_s15, 1536, %s25_s19, [#allocation4], %s4253_s9, %s4253_s9, %s4254_s10  }
   0xe   :  { %s4258_s21 = smov 384   ;;  %s4259_s22 = smov 24  }
   0xf   :  { %56 = dma.hbm_to_vmem [thread:$0]  %s49_s17, 36864, %s51_s20, [#allocation7], %s4258_s21, %s4258_s21, %s4259_s22  }
  0x10   :  { %s73_s24 = sshll.u32 %s4702_s4, 4  ;;  %s4260_s25 = smov [#allocation11]   ;;  %s74_s24 = int_to_ptr.hbm [resolvable:$true] %s73_s24 }
  0x11   :  { %s75_s26 = sshll.u32 %s4260_s25, 4  ;;  %s84_s28 = sshll.u32 %s4703_s5, 4  ;;  %s76_s26 = int_to_ptr.vmem [resolvable:$true] %s75_s26  ;;  %s85_s28 = int_to_ptr.hbm [resolvable:$true] %s84_s28 }
  0x12   :  { %78 = dma.hbm_to_vmem [thread:$0]  %s74_s24, 96, %s76_s26, [#allocation10]  }
  0x13   :  { %s4261_s29 = smov [#allocation12]  }
  0x14   :  { %s86_s30 = sshll.u32 %s4261_s29, 4  ;;  %s87_s30 = int_to_ptr.vmem [resolvable:$true] %s86_s30 }
  0x15   :  { %89 = dma.hbm_to_vmem [thread:$0]  %s85_s28, 96, %s87_s30, [#allocation13]  }
  0x16   :  { %4242 = dma.done.wait [#allocation4], 1536  }
  0x17   :  { %4243 = vsyncadd [#allocation4], 4294965760 }
  0x18   :  { %4244 = dma.done.wait [#allocation7], 38400  }
  0x19   :  { %4245 = vsyncadd [#allocation7], 4294928896 }
  0x1a   :  { %4246 = dma.done.wait [#allocation10], 192  }
  0x1b   :  { %4247 = vsyncadd [#allocation10], 4294967104 }
  0x1c   :  { %4248 = dma.done.wait [#allocation13], 96  }
  0x1d   :  { %4249 = vsyncadd [#allocation13], 4294967200  ;;  %v2758_v0 = vld [vmem:[#allocation8 + $0x150] sm:$0xf]  ;;  %v3785_v1 = vld [vmem:[#allocation8 + $0x164] sm:$0xf0] }
  0x1e   :  { %v2950_v2 = vld [vmem:[#allocation8 + $0x2d0] sm:$0xf]  ;;  %v2759_v3 = vor.u32 %v3785_v1, %v2758_v0  ;;  %v3833_v4 = vld [vmem:[#allocation8 + $0x2e4] sm:$0xf0]  ;;  %v2734_v11 = vld [vmem:[#allocation8 + $0x120] sm:$0xf] }
  0x1f   :  { %v3142_v5 = vld [vmem:[#allocation8 + $0x450] sm:$0xf]  ;;  %v3881_v6 = vld [vmem:[#allocation8 + $0x464] sm:$0xf0]  ;;  %v2951_v7 = vor.u32 %v3833_v4, %v2950_v2  ;;  %v3779_v13 = vld [vmem:[#allocation8 + $0x134] sm:$0xf0] }
  0x20   :  { %v3143_v8 = vor.u32 %v3881_v6, %v3142_v5  ;;  %v3334_v9 = vld [vmem:[#allocation8 + $0x5d0] sm:$0xf]  ;;  %v3929_v10 = vld [vmem:[#allocation8 + $0x5e4] sm:$0xf0]  ;;  %2012 = vmatpush.bf16.msra.mxu0 %v2759_v3  ;;  %v2926_v14 = vld [vmem:[#allocation8 + $0x2a0] sm:$0xf]  ;;  %v2735_v16 = vor.u32 %v3779_v13, %v2734_v11 }
  0x21   :  { %v3335_v12 = vor.u32 %v3929_v10, %v3334_v9  ;;  %v3827_v15 = vld [vmem:[#allocation8 + $0x2b4] sm:$0xf0]  ;;  %2026 = vmatpush.bf16.msra.mxu1 %v2951_v7  ;;  %v3118_v18 = vld [vmem:[#allocation8 + $0x420] sm:$0xf]  ;;  %v2710_v23 = vld [vmem:[#allocation8 + $0xf0] sm:$0xf] }
  0x22   :  { %2040 = vmatpush.bf16.msra.mxu2 %v3143_v8  ;;  %v2927_v17 = vor.u32 %v3827_v15, %v2926_v14  ;;  %v3875_v19 = vld [vmem:[#allocation8 + $0x434] sm:$0xf0]  ;;  %v3310_v20 = vld [vmem:[#allocation8 + $0x5a0] sm:$0xf]  ;;  %v3773_v24 = vld [vmem:[#allocation8 + $0x104] sm:$0xf0] }
  0x23   :  { %2054 = vmatpush.bf16.msra.mxu3 %v3335_v12  ;;  %v3119_v21 = vor.u32 %v3875_v19, %v3118_v18  ;;  %v3923_v22 = vld [vmem:[#allocation8 + $0x5b4] sm:$0xf0]  ;;  %v2902_v26 = vld [vmem:[#allocation8 + $0x270] sm:$0xf]  ;;  %v3821_v27 = vld [vmem:[#allocation8 + $0x284] sm:$0xf0]  ;;  %v2711_v29 = vor.u32 %v3773_v24, %v2710_v23 }
  0x24   :  { %v3311_v25 = vor.u32 %v3923_v22, %v3310_v20  ;;  %v3094_v28 = vld [vmem:[#allocation8 + $0x3f0] sm:$0xf]  ;;  %2013 = vmatpush.bf16.msra.mxu0 %v2735_v16  ;;  %v3869_v30 = vld [vmem:[#allocation8 + $0x404] sm:$0xf0]  ;;  %v2903_v33 = vor.u32 %v3821_v27, %v2902_v26  ;;  %v2686_v35 = vld [vmem:[#allocation8 + $0xc0] sm:$0xf] }
  0x25   :  { %v3286_v31 = vld [vmem:[#allocation8 + $0x570] sm:$0xf]  ;;  %v3917_v32 = vld [vmem:[#allocation8 + $0x584] sm:$0xf0]  ;;  %2027 = vmatpush.bf16.msra.mxu1 %v2927_v17  ;;  %v3095_v34 = vor.u32 %v3869_v30, %v3094_v28  ;;  %v3767_v36 = vld [vmem:[#allocation8 + $0xd4] sm:$0xf0] }
  0x26   :  { %2041 = vmatpush.bf16.msra.mxu2 %v3119_v21  ;;  %v2878_v37 = vld [vmem:[#allocation8 + $0x240] sm:$0xf]  ;;  %v3287_v38 = vor.u32 %v3917_v32, %v3286_v31  ;;  %v3815_v39 = vld [vmem:[#allocation8 + $0x254] sm:$0xf0]  ;;  %v2687_v44 = vor.u32 %v3767_v36, %v2686_v35  ;;  %v2662_v47 = vld [vmem:[#allocation8 + $0x90] sm:$0xf] }
  0x27   :  { %2055 = vmatpush.bf16.msra.mxu3 %v3311_v25  ;;  %v3070_v40 = vld [vmem:[#allocation8 + $0x3c0] sm:$0xf]  ;;  %v3863_v41 = vld [vmem:[#allocation8 + $0x3d4] sm:$0xf0]  ;;  %v2879_v45 = vor.u32 %v3815_v39, %v2878_v37  ;;  %v3761_v48 = vld [vmem:[#allocation8 + $0xa4] sm:$0xf0] }
  0x28   :  { %v3262_v42 = vld [vmem:[#allocation8 + $0x540] sm:$0xf]  ;;  %v3911_v43 = vld [vmem:[#allocation8 + $0x554] sm:$0xf0]  ;;  %2014 = vmatpush.bf16.msra.mxu0 %v2711_v29  ;;  %v3071_v46 = vor.u32 %v3863_v41, %v3070_v40  ;;  %v2854_v49 = vld [vmem:[#allocation8 + $0x210] sm:$0xf]  ;;  %v2663_v56 = vor.u32 %v3761_v48, %v2662_v47 }
  0x29   :  { %2028 = vmatpush.bf16.msra.mxu1 %v2903_v33  ;;  %v3263_v50 = vor.u32 %v3911_v43, %v3262_v42  ;;  %v3809_v51 = vld [vmem:[#allocation8 + $0x224] sm:$0xf0]  ;;  %v3046_v52 = vld [vmem:[#allocation8 + $0x390] sm:$0xf]  ;;  %v2638_v59 = vld [vmem:[#allocation8 + $0x60] sm:$0xf] }
  0x2a   :  { %2042 = vmatpush.bf16.msra.mxu2 %v3095_v34  ;;  %v3857_v53 = vld [vmem:[#allocation8 + $0x3a4] sm:$0xf0]  ;;  %v3238_v54 = vld [vmem:[#allocation8 + $0x510] sm:$0xf]  ;;  %v2855_v57 = vor.u32 %v3809_v51, %v2854_v49  ;;  %v3755_v60 = vld [vmem:[#allocation8 + $0x74] sm:$0xf0] }
  0x2b   :  { %2056 = vmatpush.bf16.msra.mxu3 %v3287_v38  ;;  %v3905_v55 = vld [vmem:[#allocation8 + $0x524] sm:$0xf0]  ;;  %v3047_v58 = vor.u32 %v3857_v53, %v3046_v52  ;;  %v2830_v61 = vld [vmem:[#allocation8 + $0x1e0] sm:$0xf]  ;;  %v3803_v63 = vld [vmem:[#allocation8 + $0x1f4] sm:$0xf0]  ;;  %v2639_v4 = vor.u32 %v3755_v60, %v2638_v59 }
  0x2c   :  { %2015 = vmatpush.bf16.msra.mxu0 %v2687_v44  ;;  %v3239_v62 = vor.u32 %v3905_v55, %v3238_v54  ;;  %v3022_v0 = vld [vmem:[#allocation8 + $0x360] sm:$0xf]  ;;  %v3851_v1 = vld [vmem:[#allocation8 + $0x374] sm:$0xf0]  ;;  %v2831_v5 = vor.u32 %v3803_v63, %v2830_v61  ;;  %v2614_v7 = vld [vmem:[#allocation8 + $0x30] sm:$0xf] }
  0x2d   :  { %2029 = vmatpush.bf16.msra.mxu1 %v2879_v45  ;;  %v3214_v2 = vld [vmem:[#allocation8 + $0x4e0] sm:$0xf]  ;;  %v3899_v3 = vld [vmem:[#allocation8 + $0x4f4] sm:$0xf0]  ;;  %v3023_v6 = vor.u32 %v3851_v1, %v3022_v0  ;;  %v3749_v8 = vld [vmem:[#allocation8 + $0x44] sm:$0xf0] }
  0x2e   :  { %2043 = vmatpush.bf16.msra.mxu2 %v3071_v46  ;;  %v2806_v9 = vld [vmem:[#allocation8 + $0x1b0] sm:$0xf]  ;;  %v3215_v10 = vor.u32 %v3899_v3, %v3214_v2  ;;  %v3797_v11 = vld [vmem:[#allocation8 + $0x1c4] sm:$0xf0]  ;;  %v2615_v16 = vor.u32 %v3749_v8, %v2614_v7  ;;  %v2590_v17 = vld [vmem:[#allocation8] sm:$0xf] }
  0x2f   :  { %2057 = vmatpush.bf16.msra.mxu3 %v3263_v50  ;;  %v2998_v12 = vld [vmem:[#allocation8 + $0x330] sm:$0xf]  ;;  %v3845_v13 = vld [vmem:[#allocation8 + $0x344] sm:$0xf0]  ;;  %v3743_v18 = vld [vmem:[#allocation8 + $0x14] sm:$0xf0]  ;;  %v2807_v19 = vor.u32 %v3797_v11, %v2806_v9 }
  0x30   :  { %2016 = vmatpush.bf16.msra.mxu0 %v2663_v56  ;;  %v3190_v14 = vld [vmem:[#allocation8 + $0x4b0] sm:$0xf]  ;;  %v3893_v15 = vld [vmem:[#allocation8 + $0x4c4] sm:$0xf0]  ;;  %v2999_v20 = vor.u32 %v3845_v13, %v2998_v12  ;;  %v2782_v21 = vld [vmem:[#allocation8 + $0x180] sm:$0xf]  ;;  %v2591_v31 = vor.u32 %v3743_v18, %v2590_v17 }
  0x31   :  { %2030 = vmatpush.bf16.msra.mxu1 %v2855_v57  ;;  %v3791_v22 = vld [vmem:[#allocation8 + $0x194] sm:$0xf0]  ;;  %v2974_v23 = vld [vmem:[#allocation8 + $0x300] sm:$0xf]  ;;  %v3191_v24 = vor.u32 %v3893_v15, %v3190_v14  ;;  %v3526_v28 = vld [vmem:[#allocation8 + $0x750] sm:$0xf] }
  0x32   :  { %2044 = vmatpush.bf16.msra.mxu2 %v3047_v58  ;;  %v3839_v25 = vld [vmem:[#allocation8 + $0x314] sm:$0xf0]  ;;  %v3166_v26 = vld [vmem:[#allocation8 + $0x480] sm:$0xf]  ;;  %v3977_v29 = vld [vmem:[#allocation8 + $0x764] sm:$0xf0]  ;;  %v2783_v35 = vor.u32 %v3791_v22, %v2782_v21 }
  0x33   :  { %2058 = vmatpush.bf16.msra.mxu3 %v3239_v62  ;;  %v3887_v27 = vld [vmem:[#allocation8 + $0x494] sm:$0xf0]  ;;  %v3718_v30 = vld [vmem:[#allocation8 + $0x8d0] sm:$0xf]  ;;  %v4025_v32 = vld [vmem:[#allocation8 + $0x8e4] sm:$0xf0]  ;;  %v2975_v36 = vor.u32 %v3839_v25, %v2974_v23  ;;  %v3527_v40 = vor.u32 %v3977_v29, %v3526_v28 }
  0x34   :  { %2017 = vmatpush.bf16.msra.mxu0 %v2639_v4  ;;  %v3782_v33 = vld [vmem:[#allocation8 + $0x154] sm:$0xf]  ;;  %v2760_v34 = vld [vmem:[#allocation8 + $0x168] sm:$0xf0]  ;;  %v3167_v39 = vor.u32 %v3887_v27, %v3166_v26  ;;  %v3502_v41 = vld [vmem:[#allocation8 + $0x720] sm:$0xf]  ;;  %v3719_v43 = vor.u32 %v4025_v32, %v3718_v30 }
  0x35   :  { %2031 = vmatpush.bf16.msra.mxu1 %v2831_v5  ;;  %v3830_v37 = vld [vmem:[#allocation8 + $0x2d4] sm:$0xf]  ;;  %v2952_v38 = vld [vmem:[#allocation8 + $0x2e8] sm:$0xf0]  ;;  %v3971_v42 = vld [vmem:[#allocation8 + $0x734] sm:$0xf0]  ;;  %v2763_v44 = vor.u32 %v3782_v33, %v2760_v34 }
  0x36   :  { %2045 = vmatpush.bf16.msra.mxu2 %v3023_v6  ;;  %v3694_v45 = vld [vmem:[#allocation8 + $0x8a0] sm:$0xf]  ;;  %v4019_v46 = vld [vmem:[#allocation8 + $0x8b4] sm:$0xf0]  ;;  %v3776_v47 = vld [vmem:[#allocation8 + $0x124] sm:$0xf]  ;;  %v2955_v48 = vor.u32 %v3830_v37, %v2952_v38  ;;  %v3503_v56 = vor.u32 %v3971_v42, %v3502_v41 }
  0x37   :  { %2059 = vmatpush.bf16.msra.mxu3 %v3215_v10  ;;  %v2736_v49 = vld [vmem:[#allocation8 + $0x138] sm:$0xf0]  ;;  %v3824_v50 = vld [vmem:[#allocation8 + $0x2a4] sm:$0xf]  ;;  %v3478_v52 = vld [vmem:[#allocation8 + $0x6f0] sm:$0xf]  ;;  %v3695_v61 = vor.u32 %v4019_v46, %v3694_v45 }
  0x38   :  { %2018 = vmatpush.bf16.msra.mxu0 %v2615_v16  ;;  %v2928_v51 = vld [vmem:[#allocation8 + $0x2b8] sm:$0xf0]  ;;  %v3965_v53 = vld [vmem:[#allocation8 + $0x704] sm:$0xf0]  ;;  %v4323_v54 = vld [vmem:[#allocation6] sm:$0xff]  ;;  %v2739_v62 = vor.u32 %v3776_v47, %v2736_v49  ;;  %s2570_s15 = sshll.u32 %s4705_s7, 4  ;;  %s2571_s15 = int_to_ptr.hbm [resolvable:$true] %s2570_s15 }
  0x39   :  { %2032 = vmatpush.bf16.msra.mxu1 %v2807_v19  ;;  %v4325_v55 = vld [vmem:[#allocation6 + $0x30] sm:$0xff]  ;;  %v4013_v58 = vld [vmem:[#allocation8 + $0x884] sm:$0xf0]  ;;  %v2712_v63 = vld [vmem:[#allocation8 + $0x108] sm:$0xf0]  ;;  %v2931_v2 = vor.u32 %v3824_v50, %v2928_v51  ;;  %v3479_v15 = vor.u32 %v3965_v53, %v3478_v52  ;;  %s4263_s1 = smov 1536  }
  0x3a   :  { %2046 = vmatpush.bf16.msra.mxu2 %v2999_v20  ;;  %v3670_v57 = vld [vmem:[#allocation8 + $0x870] sm:$0xf]  ;;  %v3770_v59 = vld [vmem:[#allocation8 + $0xf4] sm:$0xf]  ;;  %v4329_v60 = vpack.c.bf16 %v4325_v55, %v4323_v54  ;;  %v2904_v1 = vld [vmem:[#allocation8 + $0x288] sm:$0xf0] }
  0x3b   :  { %2060 = vmatpush.bf16.msra.mxu3 %v3191_v24  ;;  %v3818_v0 = vld [vmem:[#allocation8 + $0x274] sm:$0xf]  ;;  %v4331_v3 = vld [vmem:[#allocation8 + $0x6c0] sm:$0xf]  ;;  %v4333_v4 = vld [vmem:[#allocation8 + $0x6d4] sm:$0xf0]  ;;  %v3671_v19 = vor.u32 %v4013_v58, %v3670_v57  ;;  %v2715_v20 = vor.u32 %v3770_v59, %v2712_v63 }
  0x3c   :  { %2019 = vmatpush.bf16.msra.mxu0 %v2591_v31  ;;  %v4335_v5 = vld [vmem:[#allocation8 + $0x840] sm:$0xf]  ;;  %v4337_v6 = vld [vmem:[#allocation8 + $0x854] sm:$0xf0]  ;;  %v4339_v7 = vld [vmem:[#allocation8 + $0xc4] sm:$0xf]  ;;  %v2907_v25 = vor.u32 %v3818_v0, %v2904_v1  ;;  %v3455_v29 = vor.u32 %v4333_v4, %v4331_v3 }
  0x3d   :  { %2033 = vmatpush.bf16.msra.mxu1 %v2783_v35  ;;  %v4341_v8 = vld [vmem:[#allocation8 + $0xd8] sm:$0xf0]  ;;  %v129_v9 = vld [vmem:[#allocation6 + $0x8] sm:$0xff]  ;;  %v4346_v11 = vld [vmem:[#allocation8 + $0x244] sm:$0xf]  ;;  %v3647_v30 = vor.u32 %v4337_v6, %v4335_v5  ;;  %s4264_s16 = smov 96  }
  0x3e   :  { %2047 = vmatpush.bf16.msra.mxu2 %v2975_v36  ;;  %v4344_v10 = vld [vmem:[#allocation6 + $0x38] sm:$0xff]  ;;  %v4350_v13 = vld [vmem:[#allocation8 + $0x690] sm:$0xf]  ;;  %v4355_v16 = vld [vmem:[#allocation8 + $0x6a4] sm:$0xf0]  ;;  %v2691_v31 = vor.u32 %v4339_v7, %v4341_v8 }
  0x3f   :  { %2061 = vmatpush.bf16.msra.mxu3 %v3167_v39  ;;  %2020 = vmatmul.bf16.vlgmr.msra.gmra.mxu0 %v4329_v60  ;;  %v4348_v12 = vld [vmem:[#allocation8 + $0x258] sm:$0xf0]  ;;  %v4353_v14 = vpack.c.bf16 %v4344_v10, %v129_v9  ;;  %v4357_v17 = vld [vmem:[#allocation8 + $0x810] sm:$0xf]  ;;  %v4359_v18 = vld [vmem:[#allocation8 + $0x824] sm:$0xf0]  ;;  %v3431_v36 = vor.u32 %v4355_v16, %v4350_v13 }
  0x40   :  { %2068 = vmatpush.bf16.msrb.mxu0 %v3527_v40  ;;  %v4361_v21 = vld [vmem:[#allocation8 + $0x94] sm:$0xf]  ;;  %v4363_v22 = vld [vmem:[#allocation8 + $0xa8] sm:$0xf0]  ;;  %v4370_v26 = vld [vmem:[#allocation8 + $0x660] sm:$0xf]  ;;  %v2883_v32 = vor.u32 %v4346_v11, %v4348_v12  ;;  %v3623_v37 = vor.u32 %v4359_v18, %v4357_v17 }
  0x41   :  { %2082 = vmatpush.bf16.msrb.mxu1 %v3719_v43  ;;  %v4365_v23 = vld [vmem:[#allocation8 + $0x214] sm:$0xf]  ;;  %v4367_v24 = vld [vmem:[#allocation8 + $0x228] sm:$0xf0]  ;;  %v4372_v27 = vld [vmem:[#allocation8 + $0x674] sm:$0xf0] }
  0x42   :  { %2096 = vmatpush.bf16.msrb.mxu2 %v2763_v44  ;;  %2034 = vmatmul.bf16.vlgmr.msra.gmra.mxu1 %v4353_v14  ;;  %v130_v28 = vld [vmem:[#allocation6 + $0x10] sm:$0xff]  ;;  %v131_v33 = vld [vmem:[#allocation6 + $0x18] sm:$0xff]  ;;  %v4382_v34 = vld [vmem:[#allocation6 + $0x40] sm:$0xff]  ;;  %v2859_v49 = vor.u32 %v4365_v23, %v4367_v24  ;;  %v3407_v50 = vor.u32 %v4372_v27, %v4370_v26 }
  0x43   :  { %2110 = vmatpush.bf16.msrb.mxu3 %v2955_v48  ;;  %v4384_v35 = vld [vmem:[#allocation6 + $0x48] sm:$0xff]  ;;  %v4393_v39 = vpack.c.bf16 %v4382_v34, %v130_v28  ;;  %v4398_v41 = vld [vmem:[#allocation8 + $0x7e0] sm:$0xf]  ;;  %v4400_v42 = vld [vmem:[#allocation8 + $0x7f4] sm:$0xf0]  ;;  %v2667_v48 = vor.u32 %v4361_v21, %v4363_v22 }
  0x44   :  { %2069 = vmatpush.bf16.msrb.mxu0 %v3503_v56  ;;  %v4390_v38 = vld [vmem:[#allocation12] sm:$0x3f]  ;;  %v4396_v40 = vpack.c.bf16 %v4384_v35, %v131_v33  ;;  %v116_v47 = vld [vmem:[#allocation3] sm:$0xff]  ;;  %v4414_v52 = vld [vmem:[#allocation8 + $0x78] sm:$0xf0] }
  0x45   :  { %2083 = vmatpush.bf16.msrb.mxu1 %v3695_v61  ;;  %v182_v43 = vperm.slane %v4390_v38, 0  ;;  %v183_v44 = vperm.slane %v4390_v38, 1  ;;  %v184_v45 = vperm.slane %v4390_v38, 2  ;;  %v185_v46 = vperm.slane %v4390_v38, 3  ;;  %v4412_v51 = vld [vmem:[#allocation8 + $0x64] sm:$0xf]  ;;  %2048 = vmatmul.bf16.vlgmr.msra.gmra.mxu2 %v4393_v39 }
  0x46   :  { %2097 = vmatpush.bf16.msrb.mxu2 %v2739_v62  ;;  %v117_v53 = vld [vmem:[#allocation3 + $0x8] sm:$0xff]  ;;  %2528 = vst [vmem:[#allocation14] sm:$0xff] %v116_v47  ;;  %v4417_v56 = vld [vmem:[#allocation8 + $0x1e4] sm:$0xf]  ;;  %v4419_v57 = vld [vmem:[#allocation8 + $0x1f8] sm:$0xf0]  ;;  %2062 = vmatmul.bf16.vlgmr.msra.gmra.mxu3 %v4396_v40 }
  0x47   :  { %2111 = vmatpush.bf16.msrb.mxu3 %v2931_v2  ;;  %v4421_v58 = vld [vmem:[#allocation6 + $0x20] sm:$0xff]  ;;  %v186_v59 = vperm.slane %v4390_v38, 4  ;;  %v194_v61 = vmul.f32 %v182_v43, %v4323_v54  ;;  %v195_v62 = vmul.f32 %v183_v44, %v129_v9  ;;  %v196_v63 = vmul.f32 %v184_v45, %v130_v28  ;;  %v118_v0 = vld [vmem:[#allocation3 + $0x10] sm:$0xff]  ;;  %2529 = vst [vmem:[#allocation14 + $0x8] sm:$0xff] %v117_v53  ;;  %v4433_v2 = vld [vmem:[#allocation6 + $0x28] sm:$0xff] }
  0x48   :  { %2070 = vmatpush.bf16.msrb.mxu0 %v3479_v15  ;;  %v4431_v1 = vld [vmem:[#allocation11] sm:$0x3f]  ;;  %v187_v3 = vperm.slane %v4390_v38, 5  ;;  %v197_v4 = vmul.f32 %v185_v46, %v131_v33  ;;  %v119_v5 = vld [vmem:[#allocation3 + $0x18] sm:$0xff]  ;;  %2530 = vst [vmem:[#allocation14 + $0x10] sm:$0xff] %v118_v0 }
  0x49   :  { %2084 = vmatpush.bf16.msrb.mxu1 %v3671_v19  ;;  %v142_v54 = vperm.slane %v4431_v1, 0  ;;  %v143_v6 = vperm.slane %v4431_v1, 1  ;;  %v206_v7 = vadd.f32 %v195_v62, %v194_v61  ;;  %v120_v8 = vld [vmem:[#allocation3 + $0x20] sm:$0xff]  ;;  %v121_v9 = vld [vmem:[#allocation3 + $0x28] sm:$0xff]  ;;  %v144_v11 = vperm.slane %v4431_v1, 2  ;;  %2531 = vst [vmem:[#allocation14 + $0x18] sm:$0xff] %v119_v5 }
  0x4a   :  { %2098 = vmatpush.bf16.msrb.mxu2 %v2715_v20  ;;  %v145_v12 = vperm.slane %v4431_v1, 3  ;;  %v146_v15 = vperm.slane %v4431_v1, 4  ;;  %v3599_v19 = vor.u32 %v4400_v42, %v4398_v41  ;;  %v147_v20 = vperm.slane %v4431_v1, 5  ;;  %2532 = vst [vmem:[#allocation14 + $0x20] sm:$0xff] %v120_v8  ;;  %v4453_v28 = vld [vmem:[#allocation8 + $0x644] sm:$0xf0] }
  0x4b   :  { %2112 = vmatpush.bf16.msrb.mxu3 %v2907_v25  ;;  %v154_v21 = vmul.f32 %v142_v54, %v116_v47  ;;  %v155_v22 = vmul.f32 %v143_v6, %v117_v53  ;;  %v4451_v25 = vld [vmem:[#allocation8 + $0x630] sm:$0xf]  ;;  %2533 = vst [vmem:[#allocation14 + $0x28] sm:$0xff] %v121_v9  ;;  %v4464_v41 = vld [vmem:[#allocation8 + $0x7c4] sm:$0xf0]  ;;  %v2835_v42 = vor.u32 %v4417_v56, %v4419_v57  ;;  %v139_v26 = vld [vmem:[#allocation6 + $0x58] sm:$0xff] }
  0x4c   :  { %2071 = vmatpush.bf16.msrb.mxu0 %v3455_v29  ;;  %v2643_v29 = vor.u32 %v4412_v51, %v4414_v52  ;;  %v4462_v33 = vld [vmem:[#allocation8 + $0x7b0] sm:$0xf]  ;;  %v199_v47 = vmul.f32 %v187_v3, %v4433_v2  ;;  %v157_v51 = vmul.f32 %v145_v12, %v119_v5  ;;  %v4476_v53 = vld [vmem:[#allocation8 + $0x34] sm:$0xf]  ;;  %v4478_v61 = vld [vmem:[#allocation8 + $0x48] sm:$0xf0]  ;;  %v158_v16 = vmul.f32 %v146_v15, %v120_v8 }
  0x4d   :  { %2085 = vmatpush.bf16.msrb.mxu1 %v3647_v30  ;;  %v198_v30 = vmul.f32 %v186_v59, %v4421_v58  ;;  %v166_v52 = vadd.f32 %v155_v22, %v154_v21  ;;  %v4480_v62 = vld [vmem:[#allocation8 + $0x1b4] sm:$0xf]  ;;  %v4489_v56 = vld [vmem:[#allocation8 + $0x1c8] sm:$0xf0]  ;;  %v4491_v57 = vld [vmem:[#allocation8 + $0x600] sm:$0xf]  ;;  %v159_v17 = vmul.f32 %v147_v20, %v121_v9  ;;  %v2619_v23 = vor.u32 %v4476_v53, %v4478_v61 }
  0x4e   :  { %2099 = vmatpush.bf16.msrb.mxu2 %v2691_v31  ;;  %v207_v31 = vadd.f32 %v206_v7, %v196_v63  ;;  %v4493_v63 = vld [vmem:[#allocation8 + $0x614] sm:$0xf0]  ;;  %v3575_v7 = vor.u32 %v4464_v41, %v4462_v33  ;;  %v4510_v24 = vld [vmem:[#allocation8 + $0x780] sm:$0xf]  ;;  %v2811_v8 = vor.u32 %v4480_v62, %v4489_v56  ;;  %v4526_v21 = vld [vmem:[#allocation8 + $0x4] sm:$0xf] }
  0x4f   :  { %2113 = vmatpush.bf16.msrb.mxu3 %v2883_v32  ;;  %v156_v32 = vmul.f32 %v144_v11, %v118_v0  ;;  %v122_v0 = vld [vmem:[#allocation3 + $0x30] sm:$0xff]  ;;  %v3359_v9 = vor.u32 %v4493_v63, %v4491_v57  ;;  %v4528_v22 = vld [vmem:[#allocation8 + $0x18] sm:$0xf0]  ;;  %v3528_v61 = vld [vmem:[#allocation8 + $0x768] sm:$0xf0] }
  0x50   :  { %2072 = vmatpush.bf16.msrb.mxu0 %v3431_v36  ;;  %v208_v13 = vadd.f32 %v207_v31, %v197_v4  ;;  %v3383_v36 = vor.u32 %v4453_v28, %v4451_v25  ;;  %v123_v4 = vld [vmem:[#allocation3 + $0x38] sm:$0xff]  ;;  %2534 = vst [vmem:[#allocation14 + $0x60] sm:$0xff] %v122_v0  ;;  %v125_v25 = vld [vmem:[#allocation3 + $0x48] sm:$0xff]  ;;  %v160_v28 = vmul.f32 %v142_v54, %v122_v0  ;;  %v3974_v53 = vld [vmem:[#allocation8 + $0x754] sm:$0xf] }
  0x51   :  { %2086 = vmatpush.bf16.msrb.mxu1 %v3623_v37  ;;  %v167_v18 = vadd.f32 %v166_v52, %v156_v32  ;;  %v200_v37 = vmul.f32 %v182_v43, %v4325_v55  ;;  %v202_v55 = vmul.f32 %v184_v45, %v4382_v34  ;;  %v124_v43 = vld [vmem:[#allocation3 + $0x40] sm:$0xff]  ;;  %v203_v34 = vmul.f32 %v185_v46, %v4384_v35  ;;  %v2784_v32 = vld [vmem:[#allocation8 + $0x198] sm:$0xf0]  ;;  %v4022_v56 = vld [vmem:[#allocation8 + $0x8d4] sm:$0xf] }
  0x52   :  { %2100 = vmatpush.bf16.msrb.mxu2 %v2667_v48  ;;  %v201_v48 = vmul.f32 %v183_v44, %v4344_v10  ;;  %v209_v5 = vadd.f32 %v208_v13, %v198_v30  ;;  %v4520_v10 = vld [vmem:[#allocation6 + $0x50] sm:$0xff]  ;;  %v4533_v45 = vld [vmem:[#allocation8 + $0x184] sm:$0xf]  ;;  %2535 = vst [vmem:[#allocation14 + $0x68] sm:$0xff] %v123_v4  ;;  %v161_v35 = vmul.f32 %v143_v6, %v123_v4  ;;  %v3720_v57 = vld [vmem:[#allocation8 + $0x8e8] sm:$0xf0] }
  0x53   :  { %2114 = vmatpush.bf16.msrb.mxu3 %v2859_v49  ;;  %v4512_v49 = vld [vmem:[#allocation8 + $0x794] sm:$0xf0]  ;;  %v168_v44 = vadd.f32 %v167_v18, %v157_v51  ;;  %v162_v46 = vmul.f32 %v144_v11, %v124_v43  ;;  %v2595_v33 = vor.u32 %v4526_v21, %v4528_v22  ;;  %v204_v54 = vmul.f32 %v186_v59, %v4520_v10  ;;  %v3336_v51 = vld [vmem:[#allocation8 + $0x5e8] sm:$0xf0]  ;;  %v3696_v1 = vld [vmem:[#allocation8 + $0x8b8] sm:$0xf0] }
  0x54   :  { %2073 = vmatpush.bf16.msrb.mxu0 %v3407_v50  ;;  %v210_v27 = vadd.f32 %v209_v5, %v199_v47  ;;  %v213_v50 = vadd.f32 %v201_v48, %v200_v37  ;;  %v3551_v31 = vor.u32 %v4512_v49, %v4510_v24  ;;  %2536 = vst [vmem:[#allocation14 + $0x70] sm:$0xff] %v124_v43  ;;  %v3926_v47 = vld [vmem:[#allocation8 + $0x5d4] sm:$0xf]  ;;  %v3872_v37 = vld [vmem:[#allocation8 + $0x424] sm:$0xf] }
  0x55   :  { %2087 = vmatpush.bf16.msrb.mxu1 %v3599_v19  ;;  %v169_v30 = vadd.f32 %v168_v44, %v158_v16  ;;  %v3878_v19 = vld [vmem:[#allocation8 + $0x454] sm:$0xf]  ;;  %v163_v6 = vmul.f32 %v145_v12, %v125_v25  ;;  %v173_v11 = vadd.f32 %v161_v35, %v160_v28  ;;  %2537 = vst [vmem:[#allocation14 + $0x78] sm:$0xff] %v125_v25  ;;  %v127_v16 = vld [vmem:[#allocation3 + $0x58] sm:$0xff]  ;;  %v3920_v5 = vld [vmem:[#allocation8 + $0x5a4] sm:$0xf] }
  0x56   :  { %2101 = vmatpush.bf16.msrb.mxu2 %v2643_v29  ;;  %v3144_v29 = vld [vmem:[#allocation8 + $0x468] sm:$0xf0]  ;;  %211 = vadd.xlane.f32.xlu1 %v210_v27  ;;  %v214_v41 = vadd.f32 %v213_v50, %v202_v55  ;;  %v2787_v62 = vor.u32 %v4533_v45, %v2784_v32  ;;  %v205_v59 = vmul.f32 %v187_v3, %v139_v26  ;;  %v3120_v48 = vld [vmem:[#allocation8 + $0x438] sm:$0xf0]  ;;  %v4016_v43 = vld [vmem:[#allocation8 + $0x8a4] sm:$0xf] }
  0x57   :  { %2115 = vmatpush.bf16.msrb.mxu3 %v2835_v42  ;;  %v126_v42 = vld [vmem:[#allocation3 + $0x50] sm:$0xff]  ;;  %v170_v52 = vadd.f32 %v169_v30, %v159_v17  ;;  %2539 = vst [vmem:[#allocation14 + $0x88] sm:$0xff] %v127_v16  ;;  %v3147_v63 = vor.u32 %v3878_v19, %v3144_v29  ;;  %v3339_v18 = vor.u32 %v3926_v47, %v3336_v51  ;;  %v3504_v55 = vld [vmem:[#allocation8 + $0x738] sm:$0xf0]  ;;  %v3096_v21 = vld [vmem:[#allocation8 + $0x408] sm:$0xf0] }
  0x58   :  { %2074 = vmatpush.bf16.msrb.mxu0 %v3383_v36  ;;  %v215_v13 = vadd.f32 %v214_v41, %v203_v34  ;;  %2538 = vst [vmem:[#allocation14 + $0x80] sm:$0xff] %v126_v42  ;;  %v164_v12 = vmul.f32 %v146_v15, %v126_v42  ;;  %v174_v36 = vadd.f32 %v173_v11, %v162_v46  ;;  %v3914_v22 = vld [vmem:[#allocation8 + $0x574] sm:$0xf]  ;;  %v3288_v34 = vld [vmem:[#allocation8 + $0x588] sm:$0xf0] }
  0x59   :  { %2088 = vmatpush.bf16.msrb.mxu1 %v3575_v7  ;;  %171 = vadd.xlane.f32.xlu0 %v170_v52  ;;  %v165_v38 = vmul.f32 %v147_v20, %v127_v16  ;;  %v3531_v0 = vor.u32 %v3974_v53, %v3528_v61  ;;  %v3723_v4 = vor.u32 %v4022_v56, %v3720_v57  ;;  %v3312_v7 = vld [vmem:[#allocation8 + $0x5b8] sm:$0xf0]  ;;  %v3480_v27 = vld [vmem:[#allocation8 + $0x708] sm:$0xf0]  ;;  %v4010_v45 = vld [vmem:[#allocation8 + $0x874] sm:$0xf] }
  0x5a   :  { %2102 = vmatpush.bf16.msrb.mxu2 %v2619_v23  ;;  %v216_v17 = vadd.f32 %v215_v13, %v204_v54  ;;  %v175_v3 = vadd.f32 %v174_v36, %v163_v6  ;;  %v3968_v23 = vld [vmem:[#allocation8 + $0x724] sm:$0xf]  ;;  %v4559_v15 = vpack.c.bf16 %v4520_v10, %v4421_v58  ;;  %v4562_v24 = vpack.c.bf16 %v139_v26, %v4433_v2  ;;  %v3962_v26 = vld [vmem:[#allocation8 + $0x6f4] sm:$0xf]  ;;  %v3672_v50 = vld [vmem:[#allocation8 + $0x888] sm:$0xf0] }
  0x5b   :  { %2116 = vmatpush.bf16.msrb.mxu3 %v2811_v8  ;;  %v3123_v44 = vor.u32 %v3872_v37, %v3120_v48  ;;  %v3315_v8 = vor.u32 %v3920_v5, %v3312_v7  ;;  %v3507_v2 = vor.u32 %v3968_v23, %v3504_v55  ;;  %v3699_v10 = vor.u32 %v4016_v43, %v3696_v1  ;;  %v3860_v30 = vld [vmem:[#allocation8 + $0x3c4] sm:$0xf]  ;;  %v3264_v19 = vld [vmem:[#allocation8 + $0x558] sm:$0xf0]  ;;  %v3854_v51 = vld [vmem:[#allocation8 + $0x394] sm:$0xf] }
  0x5c   :  { %2075 = vmatpush.bf16.msrb.mxu0 %v3359_v9  ;;  %v217_v49 = vadd.f32 %v216_v17, %v205_v59  ;;  %v176_v20 = vadd.f32 %v175_v3, %v164_v12  ;;  %v3866_v9 = vld [vmem:[#allocation8 + $0x3f4] sm:$0xf]  ;;  %v3291_v28 = vor.u32 %v3914_v22, %v3288_v34  ;;  %v3483_v32 = vor.u32 %v3962_v26, %v3480_v27  ;;  %v3908_v46 = vld [vmem:[#allocation8 + $0x544] sm:$0xf]  ;;  %v3648_v41 = vld [vmem:[#allocation8 + $0x858] sm:$0xf0] }
  0x5d   :  { %2089 = vmatpush.bf16.msrb.mxu1 %v3551_v31  ;;  %v3099_v25 = vor.u32 %v3866_v9, %v3096_v21  ;;  %v3072_v31 = vld [vmem:[#allocation8 + $0x3d8] sm:$0xf0]  ;;  %v3675_v35 = vor.u32 %v4010_v45, %v3672_v50  ;;  %v3956_v29 = vld [vmem:[#allocation8 + $0x6c4] sm:$0xf]  ;;  %v3267_v47 = vor.u32 %v3908_v46, %v3264_v19  ;;  %v3048_v52 = vld [vmem:[#allocation8 + $0x3a8] sm:$0xf0] }
  0x5e   :  { %2103 = vmatpush.bf16.msrb.mxu2 %v2595_v33  ;;  %218 = vadd.xlane.f32.xlu1 %v217_v49  ;;  %v177_v58 = vadd.f32 %v176_v20, %v165_v38  ;;  %v3456_v33 = vld [vmem:[#allocation8 + $0x6d8] sm:$0xf0]  ;;  %v4004_v54 = vld [vmem:[#allocation8 + $0x844] sm:$0xf]  ;;  %v3075_v42 = vor.u32 %v3860_v30, %v3072_v31  ;;  %v3902_v53 = vld [vmem:[#allocation8 + $0x514] sm:$0xf]  ;;  %v3051_v56 = vor.u32 %v3854_v51, %v3048_v52 }
  0x5f   :  { %2117 = vmatpush.bf16.msrb.mxu3 %v2787_v62  ;;  %2076 = vmatmul.bf16.vlgmr.msrb.gmra.mxu0 %v4559_v15  ;;  %v3459_v6 = vor.u32 %v3956_v29, %v3456_v33  ;;  %v3651_v11 = vor.u32 %v4004_v54, %v3648_v41  ;;  %v3240_v61 = vld [vmem:[#allocation8 + $0x528] sm:$0xf0]  ;;  %v3950_v62 = vld [vmem:[#allocation8 + $0x694] sm:$0xf]  ;;  %v3848_v12 = vld [vmem:[#allocation8 + $0x364] sm:$0xf] }
  0x60   :  { %2124 = vmatpush.bf16.msra.mxu0 %v3147_v63  ;;  %2090 = vmatmul.bf16.vlgmr.msrb.gmra.mxu1 %v4562_v24  ;;  %v3432_v59 = vld [vmem:[#allocation8 + $0x6a8] sm:$0xf0]  ;;  %v3998_v13 = vld [vmem:[#allocation8 + $0x814] sm:$0xf]  ;;  %v3243_v57 = vor.u32 %v3902_v53, %v3240_v61  ;;  %v3024_v36 = vld [vmem:[#allocation8 + $0x378] sm:$0xf0] }
  0x61   :  { %2138 = vmatpush.bf16.msra.mxu1 %v3339_v18  ;;  %178 = vadd.xlane.f32.xlu0 %v177_v58  ;;  %v3624_v16 = vld [vmem:[#allocation8 + $0x828] sm:$0xf0]  ;;  %v3435_v63 = vor.u32 %v3950_v62, %v3432_v59  ;;  %v3896_v18 = vld [vmem:[#allocation8 + $0x4e4] sm:$0xf]  ;;  %v3216_v37 = vld [vmem:[#allocation8 + $0x4f8] sm:$0xf0] }
  0x62   :  { %2152 = vmatpush.bf16.msra.mxu2 %v3531_v0  ;;  %2118 = vmatmul.bf16.vlgmr.msrb.gmra.mxu3 %v4353_v14  ;;  %v3627_v17 = vor.u32 %v3998_v13, %v3624_v16  ;;  %v3944_v48 = vld [vmem:[#allocation8 + $0x664] sm:$0xf]  ;;  %v3408_v38 = vld [vmem:[#allocation8 + $0x678] sm:$0xf0]  ;;  %v3219_v5 = vor.u32 %v3896_v18, %v3216_v37  ;;  %v3842_v7 = vld [vmem:[#allocation8 + $0x334] sm:$0xf] }
  0x63   :  { %2166 = vmatpush.bf16.msra.mxu3 %v3723_v4  ;;  %2104 = vmatmul.bf16.vlgmr.msrb.gmra.mxu2 %v4329_v60  ;;  %v3992_v3 = vld [vmem:[#allocation8 + $0x7e4] sm:$0xf]  ;;  %v3600_v0 = vld [vmem:[#allocation8 + $0x7f8] sm:$0xf0]  ;;  %v3027_v4 = vor.u32 %v3848_v12, %v3024_v36  ;;  %v3000_v23 = vld [vmem:[#allocation8 + $0x348] sm:$0xf0]  ;;  %v3411_v49 = vor.u32 %v3944_v48, %v3408_v38 }
  0x64   :  { %2125 = vmatpush.bf16.msra.mxu0 %v3123_v44  ;;  %v3603_v55 = vor.u32 %v3992_v3, %v3600_v0  ;;  %v3890_v43 = vld [vmem:[#allocation8 + $0x4b4] sm:$0xf]  ;;  %v3192_v1 = vld [vmem:[#allocation8 + $0x4c8] sm:$0xf0]  ;;  %v3003_v21 = vor.u32 %v3842_v7, %v3000_v23  ;;  %v3836_v58 = vld [vmem:[#allocation8 + $0x304] sm:$0xf] }
  0x65   :  { %2139 = vmatpush.bf16.msra.mxu1 %v3315_v8  ;;  %v3938_v20 = vld [vmem:[#allocation8 + $0x634] sm:$0xf]  ;;  %v3384_v44 = vld [vmem:[#allocation8 + $0x648] sm:$0xf0]  ;;  %v3884_v22 = vld [vmem:[#allocation8 + $0x484] sm:$0xf] }
  0x66   :  { %2153 = vmatpush.bf16.msra.mxu2 %v3507_v2  ;;  %v3986_v8 = vld [vmem:[#allocation8 + $0x7b4] sm:$0xf]  ;;  %v3576_v9 = vld [vmem:[#allocation8 + $0x7c8] sm:$0xf0]  ;;  %v2976_v2 = vld [vmem:[#allocation8 + $0x318] sm:$0xf0]  ;;  %v3387_v27 = vor.u32 %v3938_v20, %v3384_v44 }
  0x67   :  { %2167 = vmatpush.bf16.msra.mxu3 %v3699_v10  ;;  %v3195_v10 = vor.u32 %v3890_v43, %v3192_v1  ;;  %v3168_v34 = vld [vmem:[#allocation8 + $0x498] sm:$0xf0]  ;;  %v3932_v26 = vld [vmem:[#allocation8 + $0x604] sm:$0xf]  ;;  %v3579_v45 = vor.u32 %v3986_v8, %v3576_v9  ;;  %v3834_v46 = vld [vmem:[#allocation8 + $0x2ec] sm:$0xf0] }
  0x68   :  { %2126 = vmatpush.bf16.msra.mxu0 %v3099_v25  ;;  %v3360_v50 = vld [vmem:[#allocation8 + $0x618] sm:$0xf0]  ;;  %v2766_v25 = vld [vmem:[#allocation8 + $0x158] sm:$0xf]  ;;  %v3980_v30 = vld [vmem:[#allocation8 + $0x784] sm:$0xf]  ;;  %v3171_v33 = vor.u32 %v3884_v22, %v3168_v34 }
  0x69   :  { %2140 = vmatpush.bf16.msra.mxu1 %v3291_v28  ;;  %v3786_v28 = vld [vmem:[#allocation8 + $0x16c] sm:$0xf0]  ;;  %v3552_v31 = vld [vmem:[#allocation8 + $0x798] sm:$0xf0]  ;;  %v3150_v19 = vld [vmem:[#allocation8 + $0x458] sm:$0xf] }
  0x6a   :  { %2154 = vmatpush.bf16.msra.mxu2 %v3483_v32  ;;  %v2958_v32 = vld [vmem:[#allocation8 + $0x2d8] sm:$0xf]  ;;  %v3882_v29 = vld [vmem:[#allocation8 + $0x46c] sm:$0xf0]  ;;  %v2767_v54 = vor.u32 %v3786_v28, %v2766_v25  ;;  %v3555_v51 = vor.u32 %v3980_v30, %v3552_v31  ;;  %v3780_v53 = vld [vmem:[#allocation8 + $0x13c] sm:$0xf0] }
  0x6b   :  { %2168 = vmatpush.bf16.msra.mxu3 %v3675_v35  ;;  %v2979_v35 = vor.u32 %v3836_v58, %v2976_v2  ;;  %v3342_v41 = vld [vmem:[#allocation8 + $0x5d8] sm:$0xf]  ;;  %v2959_v52 = vor.u32 %v3834_v46, %v2958_v32  ;;  %v2934_v61 = vld [vmem:[#allocation8 + $0x2a8] sm:$0xf]  ;;  %v3828_v59 = vld [vmem:[#allocation8 + $0x2bc] sm:$0xf0] }
  0x6c   :  { %2127 = vmatpush.bf16.msra.mxu0 %v3075_v42  ;;  %v3930_v42 = vld [vmem:[#allocation8 + $0x5ec] sm:$0xf0]  ;;  %v3126_v13 = vld [vmem:[#allocation8 + $0x428] sm:$0xf]  ;;  %v3876_v16 = vld [vmem:[#allocation8 + $0x43c] sm:$0xf0]  ;;  %v2935_v36 = vor.u32 %v3828_v59, %v2934_v61 }
  0x6d   :  { %2141 = vmatpush.bf16.msra.mxu1 %v3267_v47  ;;  %v3363_v47 = vor.u32 %v3932_v26, %v3360_v50  ;;  %v3343_v62 = vor.u32 %v3930_v42, %v3342_v41  ;;  %v3774_v18 = vld [vmem:[#allocation8 + $0x10c] sm:$0xf0]  ;;  %v2910_v37 = vld [vmem:[#allocation8 + $0x278] sm:$0xf]  ;;  %v3768_v43 = vld [vmem:[#allocation8 + $0xdc] sm:$0xf0] }
  0x6e   :  { %2155 = vmatpush.bf16.msra.mxu2 %v3459_v6  ;;  %v3151_v6 = vor.u32 %v3882_v29, %v3150_v19  ;;  %v3822_v38 = vld [vmem:[#allocation8 + $0x28c] sm:$0xf0]  ;;  %v3102_v3 = vld [vmem:[#allocation8 + $0x3f8] sm:$0xf]  ;;  %v2886_v1 = vld [vmem:[#allocation8 + $0x248] sm:$0xf] }
  0x6f   :  { %2169 = vmatpush.bf16.msra.mxu3 %v3651_v11  ;;  %v2742_v11 = vld [vmem:[#allocation8 + $0x128] sm:$0xf]  ;;  %v3870_v0 = vld [vmem:[#allocation8 + $0x40c] sm:$0xf0]  ;;  %v2911_v23 = vor.u32 %v3822_v38, %v2910_v37  ;;  %v3816_v44 = vld [vmem:[#allocation8 + $0x25c] sm:$0xf0] }
  0x70   :  { %2128 = vmatpush.bf16.msra.mxu0 %v3051_v56  ;;  %v3318_v56 = vld [vmem:[#allocation8 + $0x5a8] sm:$0xf]  ;;  %v2743_v12 = vor.u32 %v3780_v53, %v2742_v11  ;;  %v3864_v9 = vld [vmem:[#allocation8 + $0x3dc] sm:$0xf0]  ;;  %v2670_v34 = vld [vmem:[#allocation8 + $0x98] sm:$0xf] }
  0x71   :  { %2142 = vmatpush.bf16.msra.mxu1 %v3243_v57  ;;  %v3924_v57 = vld [vmem:[#allocation8 + $0x5bc] sm:$0xf0]  ;;  %v3078_v8 = vld [vmem:[#allocation8 + $0x3c8] sm:$0xf]  ;;  %v3762_v26 = vld [vmem:[#allocation8 + $0xac] sm:$0xf0] }
  0x72   :  { %2156 = vmatpush.bf16.msra.mxu2 %v3435_v63  ;;  %v3127_v63 = vor.u32 %v3876_v16, %v3126_v13  ;;  %v3319_v48 = vor.u32 %v3924_v57, %v3318_v56  ;;  %v3912_v58 = vld [vmem:[#allocation8 + $0x55c] sm:$0xf0]  ;;  %v3079_v22 = vor.u32 %v3864_v9, %v3078_v8  ;;  %v3810_v50 = vld [vmem:[#allocation8 + $0x22c] sm:$0xf0]  ;;  %v3054_v25 = vld [vmem:[#allocation8 + $0x398] sm:$0xf]  ;;  %v2671_v32 = vor.u32 %v3762_v26, %v2670_v34 }
  0x73   :  { %2170 = vmatpush.bf16.msra.mxu3 %v3627_v17  ;;  %v2718_v17 = vld [vmem:[#allocation8 + $0xf8] sm:$0xf]  ;;  %v3858_v28 = vld [vmem:[#allocation8 + $0x3ac] sm:$0xf0]  ;;  %v2646_v19 = vld [vmem:[#allocation8 + $0x68] sm:$0xf] }
  0x74   :  { %2129 = vmatpush.bf16.msra.mxu0 %v3027_v4  ;;  %v3294_v4 = vld [vmem:[#allocation8 + $0x578] sm:$0xf]  ;;  %v2719_v7 = vor.u32 %v3774_v18, %v2718_v17  ;;  %v3906_v31 = vld [vmem:[#allocation8 + $0x52c] sm:$0xf0]  ;;  %v3055_v46 = vor.u32 %v3858_v28, %v3054_v25  ;;  %v3756_v29 = vld [vmem:[#allocation8 + $0x7c] sm:$0xf0] }
  0x75   :  { %2143 = vmatpush.bf16.msra.mxu1 %v3219_v5  ;;  %v3918_v5 = vld [vmem:[#allocation8 + $0x58c] sm:$0xf0]  ;;  %v3246_v30 = vld [vmem:[#allocation8 + $0x518] sm:$0xf]  ;;  %v3804_v41 = vld [vmem:[#allocation8 + $0x1fc] sm:$0xf0] }
  0x76   :  { %2157 = vmatpush.bf16.msra.mxu2 %v3411_v49  ;;  %v3103_v49 = vor.u32 %v3870_v0, %v3102_v3  ;;  %v3295_v20 = vor.u32 %v3918_v5, %v3294_v4  ;;  %v3030_v42 = vld [vmem:[#allocation8 + $0x368] sm:$0xf]  ;;  %v2622_v61 = vld [vmem:[#allocation8 + $0x38] sm:$0xf]  ;;  %v3798_v16 = vld [vmem:[#allocation8 + $0x1cc] sm:$0xf0] }
  0x77   :  { %2171 = vmatpush.bf16.msra.mxu3 %v3603_v55  ;;  %v2694_v55 = vld [vmem:[#allocation8 + $0xc8] sm:$0xf]  ;;  %v2814_v59 = vld [vmem:[#allocation8 + $0x1b8] sm:$0xf]  ;;  %v3846_v57 = vld [vmem:[#allocation8 + $0x34c] sm:$0xf0] }
  0x78   :  { %2130 = vmatpush.bf16.msra.mxu0 %v3003_v21  ;;  %v3270_v21 = vld [vmem:[#allocation8 + $0x548] sm:$0xf]  ;;  %v2695_v2 = vor.u32 %v3768_v43, %v2694_v55  ;;  %v3006_v56 = vld [vmem:[#allocation8 + $0x338] sm:$0xf]  ;;  %v3744_v18 = vld [vmem:[#allocation8 + $0x1c] sm:$0xf0]  ;;  %v2815_v37 = vor.u32 %v3798_v16, %v2814_v59 }
  0x79   :  { %2144 = vmatpush.bf16.msra.mxu1 %v3195_v10  ;;  %v2887_v10 = vor.u32 %v3816_v44, %v2886_v1  ;;  %v2598_v17 = vld [vmem:[#allocation8 + $0x8] sm:$0xf]  ;;  %v3792_v3 = vld [vmem:[#allocation8 + $0x19c] sm:$0xf0]  ;;  %v3978_v55 = vld [vmem:[#allocation8 + $0x76c] sm:$0xf0] }
  0x7a   :  { %2158 = vmatpush.bf16.msra.mxu2 %v3387_v27  ;;  %v2862_v27 = vld [vmem:[#allocation8 + $0x218] sm:$0xf]  ;;  %v2790_v38 = vld [vmem:[#allocation8 + $0x188] sm:$0xf]  ;;  %v3840_v5 = vld [vmem:[#allocation8 + $0x31c] sm:$0xf0]  ;;  %v2599_v1 = vor.u32 %v3744_v18, %v2598_v17 }
  0x7b   :  { %2172 = vmatpush.bf16.msra.mxu3 %v3579_v45  ;;  %v3271_v45 = vor.u32 %v3912_v58, %v3270_v21  ;;  %v2982_v0 = vld [vmem:[#allocation8 + $0x308] sm:$0xf]  ;;  %v3726_v43 = vld [vmem:[#allocation8 + $0x8d8] sm:$0xf]  ;;  %v3783_v44 = vld [vmem:[#allocation8 + $0x15c] sm:$0xf]  ;;  %v2791_v9 = vor.u32 %v3792_v3, %v2790_v38 }
  0x7c   :  { %2131 = vmatpush.bf16.msra.mxu0 %v2979_v35  ;;  %v2863_v35 = vor.u32 %v3810_v50, %v2862_v27  ;;  %v2768_v8 = vld [vmem:[#allocation8 + $0x170] sm:$0xf0]  ;;  %v2983_v21 = vor.u32 %v3840_v5, %v2982_v0  ;;  %v3831_v58 = vld [vmem:[#allocation8 + $0x2dc] sm:$0xf]  ;;  %v3510_v27 = vld [vmem:[#allocation8 + $0x728] sm:$0xf] }
  0x7d   :  { %2145 = vmatpush.bf16.msra.mxu1 %v3171_v33  ;;  %v2838_v33 = vld [vmem:[#allocation8 + $0x1e8] sm:$0xf]  ;;  %v2771_v26 = vor.u32 %v3783_v44, %v2768_v8  ;;  %v4020_v28 = vld [vmem:[#allocation8 + $0x8bc] sm:$0xf0]  ;;  %v2888_v17 = vld [vmem:[#allocation8 + $0x260] sm:$0xf0] }
  0x7e   :  { %2159 = vmatpush.bf16.msra.mxu2 %v3363_v47  ;;  %v3852_v47 = vld [vmem:[#allocation8 + $0x37c] sm:$0xf0]  ;;  %v2839_v11 = vor.u32 %v3804_v41, %v2838_v33  ;;  %v3702_v50 = vld [vmem:[#allocation8 + $0x8a8] sm:$0xf]  ;;  %v3486_v33 = vld [vmem:[#allocation8 + $0x6f8] sm:$0xf] }
  0x7f   :  { %2173 = vmatpush.bf16.msra.mxu3 %v3555_v51  ;;  %2132 = vmatmul.bf16.vlgmr.msra.gmra.mxu0 %v4393_v39  ;;  %v3222_v51 = vld [vmem:[#allocation8 + $0x4e8] sm:$0xf]  ;;  %v3031_v53 = vor.u32 %v3852_v47, %v3030_v42  ;;  %v3678_v41 = vld [vmem:[#allocation8 + $0x878] sm:$0xf]  ;;  %v4014_v47 = vld [vmem:[#allocation8 + $0x88c] sm:$0xf0] }
  0x80   :  { %2180 = vmatpush.bf16.msrb.mxu0 %v2767_v54  ;;  %2146 = vmatmul.bf16.vlgmr.msra.gmra.mxu1 %v4396_v40  ;;  %v3247_v54 = vor.u32 %v3906_v31, %v3246_v30  ;;  %v3777_v30 = vld [vmem:[#allocation8 + $0x12c] sm:$0xf]  ;;  %v2744_v31 = vld [vmem:[#allocation8 + $0x140] sm:$0xf0]  ;;  %v3462_v59 = vld [vmem:[#allocation8 + $0x6c8] sm:$0xf] }
  0x81   :  { %2194 = vmatpush.bf16.msrb.mxu1 %v2959_v52  ;;  %2160 = vmatmul.bf16.vlgmr.msra.gmra.mxu2 %v4559_v15  ;;  %v3900_v52 = vld [vmem:[#allocation8 + $0x4fc] sm:$0xf0]  ;;  %v3654_v16 = vld [vmem:[#allocation8 + $0x848] sm:$0xf]  ;;  %v3438_v38 = vld [vmem:[#allocation8 + $0x698] sm:$0xf] }
  0x82   :  { %2208 = vmatpush.bf16.msrb.mxu2 %v3151_v6  ;;  %2174 = vmatmul.bf16.vlgmr.msra.gmra.mxu3 %v4562_v24  ;;  %v2647_v6 = vor.u32 %v3756_v29, %v2646_v19  ;;  %v3223_v13 = vor.u32 %v3900_v52, %v3222_v51  ;;  %v3703_v19 = vor.u32 %v4020_v28, %v3702_v50  ;;  %v3771_v51 = vld [vmem:[#allocation8 + $0xfc] sm:$0xf]  ;;  %v2720_v52 = vld [vmem:[#allocation8 + $0x110] sm:$0xf0]  ;;  %v3954_v3 = vld [vmem:[#allocation8 + $0x6ac] sm:$0xf0] }
  0x83   :  { %2222 = vmatpush.bf16.msrb.mxu3 %v3343_v62  ;;  %v3750_v62 = vld [vmem:[#allocation8 + $0x4c] sm:$0xf0]  ;;  %v2747_v29 = vor.u32 %v3777_v30, %v2744_v31  ;;  %v3630_v0 = vld [vmem:[#allocation8 + $0x818] sm:$0xf]  ;;  %v3414_v44 = vld [vmem:[#allocation8 + $0x668] sm:$0xf] }
  0x84   :  { %2181 = vmatpush.bf16.msrb.mxu0 %v2743_v12  ;;  %v3198_v12 = vld [vmem:[#allocation8 + $0x4b8] sm:$0xf]  ;;  %v4002_v5 = vld [vmem:[#allocation8 + $0x82c] sm:$0xf0]  ;;  %v3948_v8 = vld [vmem:[#allocation8 + $0x67c] sm:$0xf0] }
  0x85   :  { %2195 = vmatpush.bf16.msrb.mxu1 %v2935_v36  ;;  %v3894_v36 = vld [vmem:[#allocation8 + $0x4cc] sm:$0xf0]  ;;  %v3390_v50 = vld [vmem:[#allocation8 + $0x638] sm:$0xf] }
  0x86   :  { %2209 = vmatpush.bf16.msrb.mxu2 %v3127_v63  ;;  %v2623_v63 = vor.u32 %v3750_v62, %v2622_v61  ;;  %v3199_v4 = vor.u32 %v3894_v36, %v3198_v12  ;;  %v3679_v61 = vor.u32 %v4014_v47, %v3678_v41  ;;  %v2723_v62 = vor.u32 %v3771_v51, %v2720_v52  ;;  %v3765_v12 = vld [vmem:[#allocation8 + $0xcc] sm:$0xf]  ;;  %v2696_v36 = vld [vmem:[#allocation8 + $0xe0] sm:$0xf0]  ;;  %v3582_v28 = vld [vmem:[#allocation8 + $0x7b8] sm:$0xf] }
  0x87   :  { %2223 = vmatpush.bf16.msrb.mxu3 %v3319_v48  ;;  %v3007_v48 = vor.u32 %v3846_v57, %v3006_v56  ;;  %v4008_v57 = vld [vmem:[#allocation8 + $0x85c] sm:$0xf0]  ;;  %v3990_v31 = vld [vmem:[#allocation8 + $0x7cc] sm:$0xf0]  ;;  %v3558_v47 = vld [vmem:[#allocation8 + $0x788] sm:$0xf] }
  0x88   :  { %2182 = vmatpush.bf16.msrb.mxu0 %v2719_v7  ;;  %v3174_v7 = vld [vmem:[#allocation8 + $0x488] sm:$0xf]  ;;  %v3583_v41 = vor.u32 %v3990_v31, %v3582_v28  ;;  %v3984_v51 = vld [vmem:[#allocation8 + $0x79c] sm:$0xf0]  ;;  %v3741_v52 = vld [vmem:[#allocation8 + $0xc] sm:$0xf] }
  0x89   :  { %2196 = vmatpush.bf16.msrb.mxu1 %v2911_v23  ;;  %v3888_v23 = vld [vmem:[#allocation8 + $0x49c] sm:$0xf0]  ;;  %v3861_v28 = vld [vmem:[#allocation8 + $0x3cc] sm:$0xf] }
  0x8a   :  { %2210 = vmatpush.bf16.msrb.mxu2 %v3103_v49  ;;  %v3534_v49 = vld [vmem:[#allocation8 + $0x758] sm:$0xf]  ;;  %v3909_v31 = vld [vmem:[#allocation8 + $0x54c] sm:$0xf] }
  0x8b   :  { %2224 = vmatpush.bf16.msrb.mxu3 %v3295_v20  ;;  %v4026_v20 = vld [vmem:[#allocation8 + $0x8ec] sm:$0xf0] }
  0x8c   :  { %2183 = vmatpush.bf16.msrb.mxu0 %v2695_v2  ;;  %v2960_v2 = vld [vmem:[#allocation8 + $0x2f0] sm:$0xf0]  ;;  %v3727_v34 = vor.u32 %v4026_v20, %v3726_v43  ;;  %v3439_v43 = vor.u32 %v3954_v3, %v3438_v38 }
  0x8d   :  { %2197 = vmatpush.bf16.msrb.mxu1 %v2887_v10  ;;  %v3175_v10 = vor.u32 %v3888_v23, %v3174_v7  ;;  %v2963_v25 = vor.u32 %v3831_v58, %v2960_v2  ;;  %v3759_v7 = vld [vmem:[#allocation8 + $0x9c] sm:$0xf]  ;;  %v2672_v23 = vld [vmem:[#allocation8 + $0xb0] sm:$0xf0]  ;;  %v3996_v58 = vld [vmem:[#allocation8 + $0x7fc] sm:$0xf0] }
  0x8e   :  { %2211 = vmatpush.bf16.msrb.mxu2 %v3079_v22  ;;  %v3535_v22 = vor.u32 %v3978_v55, %v3534_v49  ;;  %v3807_v49 = vld [vmem:[#allocation8 + $0x21c] sm:$0xf]  ;;  %v2864_v55 = vld [vmem:[#allocation8 + $0x230] sm:$0xf0]  ;;  %v2675_v20 = vor.u32 %v3759_v7, %v2672_v23  ;;  %v3753_v2 = vld [vmem:[#allocation8 + $0x6c] sm:$0xf] }
  0x8f   :  { %2225 = vmatpush.bf16.msrb.mxu3 %v3271_v45  ;;  %v3972_v45 = vld [vmem:[#allocation8 + $0x73c] sm:$0xf0]  ;;  %v3320_v23 = vld [vmem:[#allocation8 + $0x5c0] sm:$0xf0] }
  0x90   :  { %2184 = vmatpush.bf16.msrb.mxu0 %v2671_v32  ;;  %v3825_v32 = vld [vmem:[#allocation8 + $0x2ac] sm:$0xf] }
  0x91   :  { %2198 = vmatpush.bf16.msrb.mxu1 %v2863_v35  ;;  %v2936_v35 = vld [vmem:[#allocation8 + $0x2c0] sm:$0xf0] }
  0x92   :  { %2212 = vmatpush.bf16.msrb.mxu2 %v3055_v46  ;;  %v3511_v46 = vor.u32 %v3972_v45, %v3510_v27  ;;  %v2939_v42 = vor.u32 %v3825_v32, %v2936_v35  ;;  %v3747_v32 = vld [vmem:[#allocation8 + $0x3c] sm:$0xf]  ;;  %v2624_v35 = vld [vmem:[#allocation8 + $0x50] sm:$0xf0] }
  0x93   :  { %2226 = vmatpush.bf16.msrb.mxu3 %v3247_v54  ;;  %v3966_v54 = vld [vmem:[#allocation8 + $0x70c] sm:$0xf0] }
  0x94   :  { %2185 = vmatpush.bf16.msrb.mxu0 %v2647_v6  ;;  %v3819_v6 = vld [vmem:[#allocation8 + $0x27c] sm:$0xf] }
  0x95   :  { %2199 = vmatpush.bf16.msrb.mxu1 %v2839_v11  ;;  %v2912_v11 = vld [vmem:[#allocation8 + $0x290] sm:$0xf0] }
  0x96   :  { %2213 = vmatpush.bf16.msrb.mxu2 %v3031_v53  ;;  %v3487_v53 = vor.u32 %v3966_v54, %v3486_v33  ;;  %v2915_v56 = vor.u32 %v3819_v6, %v2912_v11  ;;  %v3366_v33 = vld [vmem:[#allocation8 + $0x608] sm:$0xf]  ;;  %v3936_v54 = vld [vmem:[#allocation8 + $0x61c] sm:$0xf0]  ;;  %v2600_v11 = vld [vmem:[#allocation8 + $0x20] sm:$0xf0] }
  0x97   :  { %2227 = vmatpush.bf16.msrb.mxu3 %v3223_v13  ;;  %v3960_v13 = vld [vmem:[#allocation8 + $0x6dc] sm:$0xf0] }
  0x98   :  { %2186 = vmatpush.bf16.msrb.mxu0 %v2623_v63  ;;  %v3813_v63 = vld [vmem:[#allocation8 + $0x24c] sm:$0xf]  ;;  %v3463_v18 = vor.u32 %v3960_v13, %v3462_v59  ;;  %v3152_v59 = vld [vmem:[#allocation8 + $0x470] sm:$0xf0]  ;;  %v3927_v13 = vld [vmem:[#allocation8 + $0x5dc] sm:$0xf] }
  0x99   :  { %2200 = vmatpush.bf16.msrb.mxu1 %v2815_v37  ;;  %v3655_v37 = vor.u32 %v4008_v57, %v3654_v16  ;;  %v3367_v16 = vor.u32 %v3936_v54, %v3366_v33  ;;  %v3975_v57 = vld [vmem:[#allocation8 + $0x75c] sm:$0xf]  ;;  %v3656_v33 = vld [vmem:[#allocation8 + $0x860] sm:$0xf0] }
  0x9a   :  { %2214 = vmatpush.bf16.msrb.mxu2 %v3007_v48  ;;  %v2699_v48 = vor.u32 %v3765_v12, %v2696_v36  ;;  %v3536_v12 = vld [vmem:[#allocation8 + $0x770] sm:$0xf0]  ;;  %v3559_v36 = vor.u32 %v3984_v51, %v3558_v47  ;;  %v3855_v47 = vld [vmem:[#allocation8 + $0x39c] sm:$0xf] }
  0x9b   :  { %2228 = vmatpush.bf16.msrb.mxu3 %v3199_v4  ;;  %v2891_v4 = vor.u32 %v3813_v63, %v2888_v17  ;;  %v2603_v63 = vor.u32 %v3741_v52, %v2600_v11  ;;  %v4023_v17 = vld [vmem:[#allocation8 + $0x8dc] sm:$0xf]  ;;  %v3539_v3 = vor.u32 %v3975_v57, %v3536_v12  ;;  %v3056_v51 = vld [vmem:[#allocation8 + $0x3b0] sm:$0xf0]  ;;  %v3849_v57 = vld [vmem:[#allocation8 + $0x36c] sm:$0xf] }
  0x9c   :  { %2187 = vmatpush.bf16.msrb.mxu0 %v2599_v1  ;;  %v3631_v1 = vor.u32 %v4002_v5, %v3630_v0  ;;  %v3873_v0 = vld [vmem:[#allocation8 + $0x42c] sm:$0xf]  ;;  %v3903_v52 = vld [vmem:[#allocation8 + $0x51c] sm:$0xf]  ;;  %v3248_v11 = vld [vmem:[#allocation8 + $0x530] sm:$0xf0] }
  0x9d   :  { %2201 = vmatpush.bf16.msrb.mxu1 %v2791_v9  ;;  %v3606_v9 = vld [vmem:[#allocation8 + $0x7e8] sm:$0xf]  ;;  %v3921_v5 = vld [vmem:[#allocation8 + $0x5ac] sm:$0xf]  ;;  %v3032_v12 = vld [vmem:[#allocation8 + $0x380] sm:$0xf0] }
  0x9e   :  { %2215 = vmatpush.bf16.msrb.mxu2 %v2983_v21  ;;  %v2867_v21 = vor.u32 %v3807_v49, %v2864_v55  ;;  %v3607_v27 = vor.u32 %v3996_v58, %v3606_v9  ;;  %v3969_v49 = vld [vmem:[#allocation8 + $0x72c] sm:$0xf]  ;;  %v3512_v55 = vld [vmem:[#allocation8 + $0x740] sm:$0xf0]  ;;  %v3867_v9 = vld [vmem:[#allocation8 + $0x3fc] sm:$0xf] }
  0x9f   :  { %2229 = vmatpush.bf16.msrb.mxu3 %v3175_v10  ;;  %2188 = vmatmul.bf16.vlgmr.msrb.gmra.mxu0 %v4329_v60  ;;  %v2648_v10 = vld [vmem:[#allocation8 + $0x80] sm:$0xf0]  ;;  %v3915_v58 = vld [vmem:[#allocation8 + $0x57c] sm:$0xf] }
  0xa0   :  { %2236 = vmatpush.bf16.msra.mxu0 %v3535_v22  ;;  %2202 = vmatmul.bf16.vlgmr.msrb.gmra.mxu1 %v4353_v14  ;;  %v3801_v22 = vld [vmem:[#allocation8 + $0x1ec] sm:$0xf]  ;;  %v2651_v45 = vor.u32 %v3753_v2, %v2648_v10  ;;  %v3296_v10 = vld [vmem:[#allocation8 + $0x590] sm:$0xf0] }
  0xa1   :  { %2250 = vmatpush.bf16.msra.mxu1 %v3727_v34  ;;  %2216 = vmatmul.bf16.vlgmr.msrb.gmra.mxu2 %v4393_v39  ;;  %v2840_v34 = vld [vmem:[#allocation8 + $0x200] sm:$0xf0] }
  0xa2   :  { %2264 = vmatpush.bf16.msra.mxu2 %v2771_v26  ;;  %2230 = vmatmul.bf16.vlgmr.msrb.gmra.mxu3 %v4396_v40  ;;  %v3415_v26 = vor.u32 %v3948_v8, %v3414_v44  ;;  %v2843_v30 = vor.u32 %v3801_v22, %v2840_v34  ;;  %v3323_v44 = vor.u32 %v3921_v5, %v3320_v23  ;;  %v3963_v22 = vld [vmem:[#allocation8 + $0x6fc] sm:$0xf]  ;;  %v3488_v34 = vld [vmem:[#allocation8 + $0x710] sm:$0xf0] }
  0xa3   :  { %2278 = vmatpush.bf16.msra.mxu3 %v2963_v25  ;;  %v3942_v25 = vld [vmem:[#allocation8 + $0x64c] sm:$0xf0]  ;;  %v3515_v8 = vor.u32 %v3969_v49, %v3512_v55  ;;  %v3843_v23 = vld [vmem:[#allocation8 + $0x33c] sm:$0xf]  ;;  %v3008_v49 = vld [vmem:[#allocation8 + $0x350] sm:$0xf0] }
  0xa4   :  { %2237 = vmatpush.bf16.msra.mxu0 %v3511_v46  ;;  %v3795_v46 = vld [vmem:[#allocation8 + $0x1bc] sm:$0xf] }
  0xa5   :  { %2251 = vmatpush.bf16.msra.mxu1 %v3703_v19  ;;  %v2816_v19 = vld [vmem:[#allocation8 + $0x1d0] sm:$0xf0]  ;;  %v3891_v55 = vld [vmem:[#allocation8 + $0x4bc] sm:$0xf] }
  0xa6   :  { %2265 = vmatpush.bf16.msra.mxu2 %v2747_v29  ;;  %v3391_v29 = vor.u32 %v3942_v25, %v3390_v50  ;;  %v2819_v6 = vor.u32 %v3795_v46, %v2816_v19  ;;  %v3299_v50 = vor.u32 %v3915_v58, %v3296_v10  ;;  %v3491_v25 = vor.u32 %v3963_v22, %v3488_v34  ;;  %v3957_v46 = vld [vmem:[#allocation8 + $0x6cc] sm:$0xf]  ;;  %v3464_v19 = vld [vmem:[#allocation8 + $0x6e0] sm:$0xf0]  ;;  %v3987_v58 = vld [vmem:[#allocation8 + $0x7bc] sm:$0xf] }
  0xa7   :  { %2279 = vmatpush.bf16.msra.mxu3 %v2939_v42  ;;  %v2627_v42 = vor.u32 %v3747_v32, %v2624_v35  ;;  %v3272_v35 = vld [vmem:[#allocation8 + $0x560] sm:$0xf0]  ;;  %v3011_v10 = vor.u32 %v3843_v23, %v3008_v49  ;;  %v3837_v22 = vld [vmem:[#allocation8 + $0x30c] sm:$0xf]  ;;  %v3326_v49 = vld [vmem:[#allocation8 + $0x5b0] sm:$0xf] }
  0xa8   :  { %2238 = vmatpush.bf16.msra.mxu0 %v3487_v53  ;;  %v3789_v53 = vld [vmem:[#allocation8 + $0x18c] sm:$0xf]  ;;  %v2984_v34 = vld [vmem:[#allocation8 + $0x320] sm:$0xf0] }
  0xa9   :  { %2252 = vmatpush.bf16.msra.mxu1 %v3679_v61  ;;  %v2792_v61 = vld [vmem:[#allocation8 + $0x1a0] sm:$0xf0] }
  0xaa   :  { %2266 = vmatpush.bf16.msra.mxu2 %v2723_v62  ;;  %v3879_v62 = vld [vmem:[#allocation8 + $0x45c] sm:$0xf] }
  0xab   :  { %2280 = vmatpush.bf16.msra.mxu3 %v2915_v56  ;;  %v3344_v56 = vld [vmem:[#allocation8 + $0x5f0] sm:$0xf0] }
  0xac   :  { %2239 = vmatpush.bf16.msra.mxu0 %v3463_v18  ;;  %v3728_v18 = vld [vmem:[#allocation8 + $0x8f0] sm:$0xf0]  ;;  %v3347_v38 = vor.u32 %v3927_v13, %v3344_v56  ;;  %v3059_v13 = vor.u32 %v3855_v47, %v3056_v51  ;;  %v2987_v47 = vor.u32 %v3837_v22, %v2984_v34  ;;  %v3835_v51 = vld [vmem:[#allocation8 + $0x2f4] sm:$0xf0]  ;;  %v2918_v22 = vld [vmem:[#allocation8 + $0x280] sm:$0xf] }
  0xad   :  { %2253 = vmatpush.bf16.msra.mxu1 %v3655_v37  ;;  %v2795_v37 = vor.u32 %v3789_v53, %v2792_v61  ;;  %v3731_v7 = vor.u32 %v4023_v17, %v3728_v18  ;;  %v3951_v53 = vld [vmem:[#allocation8 + $0x69c] sm:$0xf]  ;;  %v3440_v61 = vld [vmem:[#allocation8 + $0x6b0] sm:$0xf0]  ;;  %v3224_v17 = vld [vmem:[#allocation8 + $0x500] sm:$0xf0] }
  0xae   :  { %2267 = vmatpush.bf16.msra.mxu2 %v2699_v48  ;;  %v3155_v48 = vor.u32 %v3879_v62, %v3152_v59  ;;  %v3999_v62 = vld [vmem:[#allocation8 + $0x81c] sm:$0xf]  ;;  %v3632_v59 = vld [vmem:[#allocation8 + $0x830] sm:$0xf0]  ;;  %v3443_v56 = vor.u32 %v3951_v53, %v3440_v61  ;;  %v3945_v18 = vld [vmem:[#allocation8 + $0x66c] sm:$0xf] }
  0xaf   :  { %2281 = vmatpush.bf16.msra.mxu3 %v2891_v4  ;;  %v3128_v4 = vld [vmem:[#allocation8 + $0x440] sm:$0xf0]  ;;  %v3350_v61 = vld [vmem:[#allocation8 + $0x5e0] sm:$0xf]  ;;  %v3823_v34 = vld [vmem:[#allocation8 + $0x294] sm:$0xf0] }
  0xb0   :  { %2240 = vmatpush.bf16.msra.mxu0 %v3439_v43  ;;  %v4017_v43 = vld [vmem:[#allocation8 + $0x8ac] sm:$0xf] }
  0xb1   :  { %2254 = vmatpush.bf16.msra.mxu1 %v3631_v1  ;;  %v3704_v1 = vld [vmem:[#allocation8 + $0x8c0] sm:$0xf0] }
  0xb2   :  { %2268 = vmatpush.bf16.msra.mxu2 %v2675_v20  ;;  %v3131_v20 = vor.u32 %v3873_v0, %v3128_v4  ;;  %v3707_v2 = vor.u32 %v4017_v43, %v3704_v1  ;;  %v4580_v0 = vld [vmem:[#allocation9] sm:$0x3f] }
  0xb3   :  { %2282 = vmatpush.bf16.msra.mxu3 %v2867_v21  ;;  %v3104_v21 = vld [vmem:[#allocation8 + $0x410] sm:$0xf0] }
  0xb4   :  { %2241 = vmatpush.bf16.msra.mxu0 %v3415_v26  ;;  %v4011_v26 = vld [vmem:[#allocation8 + $0x87c] sm:$0xf] }
  0xb5   :  { %2255 = vmatpush.bf16.msra.mxu1 %v3607_v27  ;;  %v3680_v27 = vld [vmem:[#allocation8 + $0x890] sm:$0xf0] }
  0xb6   :  { %2269 = vmatpush.bf16.msra.mxu2 %v2651_v45  ;;  %v3107_v45 = vor.u32 %v3867_v9, %v3104_v21  ;;  %v3683_v32 = vor.u32 %v4011_v26, %v3680_v27  ;;  %v560_v21 = vperm.slane %v4580_v0, 0  ;;  %v223_v26 = vstv %s4704_s6  ;;  %s4262_s6 = smov [#allocation14]  }
  0xb7   :  { %2283 = vmatpush.bf16.msra.mxu3 %v2843_v30  ;;  %v3080_v30 = vld [vmem:[#allocation8 + $0x3e0] sm:$0xf0]  ;;  %s2568_s12 = sshll.u32 %s4262_s6, 4  ;;  %s2569_s12 = int_to_ptr.vmem [resolvable:$true] %s2568_s12 }
  0xb8   :  { %2242 = vmatpush.bf16.msra.mxu0 %v3391_v29  ;;  %v4005_v29 = vld [vmem:[#allocation8 + $0x84c] sm:$0xf]  ;;  %v3083_v54 = vor.u32 %v3861_v28, %v3080_v30  ;;  %v3176_v28 = vld [vmem:[#allocation8 + $0x4a0] sm:$0xf0] }
  0xb9   :  { %2256 = vmatpush.bf16.msra.mxu1 %v3583_v41  ;;  %v3275_v41 = vor.u32 %v3909_v31, %v3272_v35  ;;  %v3933_v30 = vld [vmem:[#allocation8 + $0x60c] sm:$0xf]  ;;  %v3368_v35 = vld [vmem:[#allocation8 + $0x620] sm:$0xf0] }
  0xba   :  { %2270 = vmatpush.bf16.msra.mxu2 %v2627_v42  ;;  %v3467_v42 = vor.u32 %v3957_v46, %v3464_v19  ;;  %v3981_v46 = vld [vmem:[#allocation8 + $0x78c] sm:$0xf]  ;;  %v3560_v19 = vld [vmem:[#allocation8 + $0x7a0] sm:$0xf0]  ;;  %v3371_v53 = vor.u32 %v3933_v30, %v3368_v35  ;;  %v2919_v35 = vor.u32 %v3823_v34, %v2918_v22  ;;  %v3038_v22 = vld [vmem:[#allocation8 + $0x370] sm:$0xf] }
  0xbb   :  { %2284 = vmatpush.bf16.msra.mxu3 %v2819_v6  ;;  %v3659_v6 = vor.u32 %v4005_v29, %v3656_v33  ;;  %v2774_v33 = vld [vmem:[#allocation8 + $0x160] sm:$0xf]  ;;  %v3853_v34 = vld [vmem:[#allocation8 + $0x384] sm:$0xf0] }
  0xbc   :  { %2243 = vmatpush.bf16.msra.mxu0 %v3367_v16  ;;  %v3251_v16 = vor.u32 %v3903_v52, %v3248_v11  ;;  %v3158_v52 = vld [vmem:[#allocation8 + $0x460] sm:$0xf] }
  0xbd   :  { %2257 = vmatpush.bf16.msra.mxu1 %v3559_v36  ;;  %v3897_v36 = vld [vmem:[#allocation8 + $0x4ec] sm:$0xf] }
  0xbe   :  { %2271 = vmatpush.bf16.msra.mxu2 %v2603_v63  ;;  %v3635_v63 = vor.u32 %v3999_v62, %v3632_v59  ;;  %v3227_v4 = vor.u32 %v3897_v36, %v3224_v17  ;;  %v3931_v62 = vld [vmem:[#allocation8 + $0x5f4] sm:$0xf0] }
  0xbf   :  { %2285 = vmatpush.bf16.msra.mxu3 %v2795_v37  ;;  %2244 = vmatmul.bf16.vlgmr.msra.gmra.mxu0 %v4559_v15  ;;  %v3416_v37 = vld [vmem:[#allocation8 + $0x680] sm:$0xf0]  ;;  %v2035_v9 = vpop.f32.mrf.mxu1 }
  0xc0   :  { %2292 = vmatpush.bf16.msrb.mxu0 %v3155_v48  ;;  %2258 = vmatmul.bf16.vlgmr.msra.gmra.mxu1 %v4562_v24  ;;  %v3993_v48 = vld [vmem:[#allocation8 + $0x7ec] sm:$0xf]  ;;  %v3419_v5 = vor.u32 %v3945_v18, %v3416_v37  ;;  %v3781_v18 = vld [vmem:[#allocation8 + $0x144] sm:$0xf0]  ;;  %v2942_v37 = vld [vmem:[#allocation8 + $0x2b0] sm:$0xf] }
  0xc1   :  { %2306 = vmatpush.bf16.msrb.mxu1 %v3347_v38  ;;  %2272 = vmatmul.bf16.vlgmr.msra.gmra.mxu2 %v4329_v60  ;;  %v3608_v38 = vld [vmem:[#allocation8 + $0x800] sm:$0xf0] }
  0xc2   :  { %2320 = vmatpush.bf16.msrb.mxu2 %v3539_v3  ;;  %2286 = vmatmul.bf16.vlgmr.msra.gmra.mxu3 %v4353_v14  ;;  %v3035_v3 = vor.u32 %v3849_v57, %v3032_v12  ;;  %v3611_v1 = vor.u32 %v3993_v48, %v3608_v38  ;;  %v3829_v48 = vld [vmem:[#allocation8 + $0x2c4] sm:$0xf0]  ;;  %v3351_v38 = vor.u32 %v3931_v62, %v3350_v61 }
  0xc3   :  { %2334 = vmatpush.bf16.msrb.mxu3 %v3731_v7  ;;  %v2021_v7 = vpop.f32.mrf.mxu0 }
  0xc4   :  { %2293 = vmatpush.bf16.msrb.mxu0 %v3131_v20  ;;  %v3200_v20 = vld [vmem:[#allocation8 + $0x4d0] sm:$0xf0]  ;;  %v2022_v29 = vadd.f32 %v2021_v7, %v560_v21 }
  0xc5   :  { %2307 = vmatpush.bf16.msrb.mxu1 %v3323_v44  ;;  %v3939_v44 = vld [vmem:[#allocation8 + $0x63c] sm:$0xf] }
  0xc6   :  { %2321 = vmatpush.bf16.msrb.mxu2 %v3515_v8  ;;  %v3392_v8 = vld [vmem:[#allocation8 + $0x650] sm:$0xf0]  ;;  %v2036_v12 = vadd.f32 %v2035_v9, %v2022_v29 }
  0xc7   :  { %2335 = vmatpush.bf16.msrb.mxu3 %v3707_v2  ;;  %v3584_v2 = vld [vmem:[#allocation8 + $0x7d0] sm:$0xf0]  ;;  %v2037_v7 = vpop.f32.mrf.mxu1 }
  0xc8   :  { %2294 = vmatpush.bf16.msrb.mxu0 %v3107_v45  ;;  %v3203_v45 = vor.u32 %v3891_v55, %v3200_v20  ;;  %v2049_v57 = vpop.f32.mrf.mxu2  ;;  %v3925_v55 = vld [vmem:[#allocation8 + $0x5c4] sm:$0xf0]  ;;  %v2943_v20 = vor.u32 %v3829_v48, %v2942_v37  ;;  %v3062_v37 = vld [vmem:[#allocation8 + $0x3a0] sm:$0xf]  ;;  %v3859_v48 = vld [vmem:[#allocation8 + $0x3b4] sm:$0xf0] }
  0xc9   :  { %2308 = vmatpush.bf16.msrb.mxu1 %v3299_v50  ;;  %v212_v43 = vpop.xlane.xlu1 %211  ;;  %v3395_v50 = vor.u32 %v3939_v44, %v3392_v8  ;;  %v2726_v44 = vld [vmem:[#allocation8 + $0x100] sm:$0xf]  ;;  %v2063_v8 = vpop.f32.mrf.mxu3 }
  0xca   :  { %2322 = vmatpush.bf16.msrb.mxu2 %v3491_v25  ;;  %v3885_v25 = vld [vmem:[#allocation8 + $0x48c] sm:$0xf] }
  0xcb   :  { %2336 = vmatpush.bf16.msrb.mxu3 %v3683_v32  ;;  %v3587_v32 = vor.u32 %v3987_v58, %v3584_v2  ;;  %v3179_v11 = vor.u32 %v3885_v25, %v3176_v28  ;;  %v2050_v2 = vadd.f32 %v2049_v57, %v2036_v12  ;;  %v3871_v25 = vld [vmem:[#allocation8 + $0x414] sm:$0xf0]  ;;  %v2678_v12 = vld [vmem:[#allocation8 + $0xa0] sm:$0xf] }
  0xcc   :  { %2295 = vmatpush.bf16.msrb.mxu0 %v3083_v54  ;;  %v172_v27 = vpop.xlane.xlu0 %171  ;;  %v3787_v54 = vld [vmem:[#allocation8 + $0x174] sm:$0xf0] }
  0xcd   :  { %2309 = vmatpush.bf16.msrb.mxu1 %v3275_v41  ;;  %v220_v31 = vadd.f32 %v212_v43, %v172_v27  ;;  %v2966_v41 = vld [vmem:[#allocation8 + $0x2e0] sm:$0xf]  ;;  %v3919_v28 = vld [vmem:[#allocation8 + $0x594] sm:$0xf0] }
  0xce   :  { %2323 = vmatpush.bf16.msrb.mxu2 %v3467_v42 }
  0xcf   :  { %2337 = vmatpush.bf16.msrb.mxu3 %v3659_v6  ;;  %v224_v42 = vadd.f32 %v223_v26, %v220_v31  ;;  %v3883_v6 = vld [vmem:[#allocation8 + $0x474] sm:$0xf0] }
  0xd0   :  { %2296 = vmatpush.bf16.msrb.mxu0 %v3059_v13  ;;  %v3563_v13 = vor.u32 %v3981_v46, %v3560_v19  ;;  %v3159_v17 = vor.u32 %v3883_v6, %v3158_v52  ;;  %v3769_v46 = vld [vmem:[#allocation8 + $0xe4] sm:$0xf0]  ;;  %v2051_v6 = vpop.f32.mrf.mxu2 }
  0xd1   :  { %2310 = vmatpush.bf16.msrb.mxu1 %v3251_v16  ;;  %v2586_v59 = vmul.f32 -1.442695, %v224_v42  ;;  %v2775_v16 = vor.u32 %v3787_v54, %v2774_v33  ;;  %v219_v36 = vpop.xlane.xlu1 %218  ;;  %v2064_v54 = vadd.f32 %v2063_v8, %v2050_v2  ;;  %v3817_v42 = vld [vmem:[#allocation8 + $0x264] sm:$0xf0] }
  0xd2   :  { %2324 = vmatpush.bf16.msrb.mxu2 %v3443_v56  ;;  %v2750_v56 = vld [vmem:[#allocation8 + $0x130] sm:$0xf]  ;;  %v3865_v52 = vld [vmem:[#allocation8 + $0x3e4] sm:$0xf0] }
  0xd3   :  { %2338 = vmatpush.bf16.msrb.mxu3 %v3635_v63  ;;  %v2967_v63 = vor.u32 %v3835_v51, %v2966_v41  ;;  %4041 = vpow2.f32 %v2586_v59  ;;  %v2894_v41 = vld [vmem:[#allocation8 + $0x250] sm:$0xf] }
  0xd4   :  { %2297 = vmatpush.bf16.msrb.mxu0 %v3035_v3  ;;  %v2023_v3 = vpop.f32.mrf.mxu0  ;;  %v179_v23 = vpop.xlane.xlu0 %178  ;;  %v3086_v51 = vld [vmem:[#allocation8 + $0x3d0] sm:$0xf]  ;;  %v2895_v59 = vor.u32 %v3817_v42, %v2894_v41  ;;  %v3014_v41 = vld [vmem:[#allocation8 + $0x340] sm:$0xf] }
  0xd5   :  { %2311 = vmatpush.bf16.msrb.mxu1 %v3227_v4  ;;  %v3134_v4 = vld [vmem:[#allocation8 + $0x430] sm:$0xf]  ;;  %v221_v43 = vadd.f32 %v219_v36, %v179_v23  ;;  %v2024_v9 = vadd.f32 %v2023_v3, %v560_v21  ;;  %v3302_v21 = vld [vmem:[#allocation8 + $0x580] sm:$0xf]  ;;  %v3763_v36 = vld [vmem:[#allocation8 + $0xb4] sm:$0xf0] }
  0xd6   :  { %2325 = vmatpush.bf16.msrb.mxu2 %v3419_v5  ;;  %v3877_v5 = vld [vmem:[#allocation8 + $0x444] sm:$0xf0]  ;;  %v2679_v23 = vor.u32 %v3763_v36, %v2678_v12  ;;  %v2798_v12 = vld [vmem:[#allocation8 + $0x190] sm:$0xf] }
  0xd7   :  { %2339 = vmatpush.bf16.msrb.mxu3 %v3611_v1  ;;  %v2751_v1 = vor.u32 %v3781_v18, %v2750_v56  ;;  %v3135_v58 = vor.u32 %v3877_v5, %v3134_v4  ;;  %v225_v27 = vadd.f32 %v223_v26, %v221_v43  ;;  %v2702_v26 = vld [vmem:[#allocation8 + $0xd0] sm:$0xf]  ;;  %v2038_v29 = vadd.f32 %v2037_v7, %v2024_v9  ;;  %v3811_v18 = vld [vmem:[#allocation8 + $0x234] sm:$0xf0]  ;;  %v3254_v4 = vld [vmem:[#allocation8 + $0x520] sm:$0xf] }
  0xd8   :  { %2298 = vmatpush.bf16.msrb.mxu0 %v3011_v10  ;;  %v3775_v10 = vld [vmem:[#allocation8 + $0x114] sm:$0xf0]  ;;  %v2703_v62 = vor.u32 %v3769_v46, %v2702_v26  ;;  %v3087_v56 = vor.u32 %v3865_v52, %v3086_v51  ;;  %v2846_v9 = vld [vmem:[#allocation8 + $0x1f0] sm:$0xf]  ;;  %v3206_v52 = vld [vmem:[#allocation8 + $0x4c0] sm:$0xf] }
  0xd9   :  { %2312 = vmatpush.bf16.msrb.mxu1 %v3203_v45  ;;  %v3327_v45 = vor.u32 %v3925_v55, %v3326_v49  ;;  %v4042_v30 = vpop.eup %4041  ;;  %v2587_v31 = vmul.f32 -1.442695, %v225_v27  ;;  %v2052_v57 = vadd.f32 %v2051_v6, %v2038_v29  ;;  %v3907_v5 = vld [vmem:[#allocation8 + $0x534] sm:$0xf0]  ;;  %v2654_v49 = vld [vmem:[#allocation8 + $0x70] sm:$0xf]  ;;  %v3039_v29 = vor.u32 %v3853_v34, %v3038_v22 }
  0xda   :  { %2326 = vmatpush.bf16.msrb.mxu2 %v3395_v50  ;;  %v3110_v50 = vld [vmem:[#allocation8 + $0x400] sm:$0xf]  ;;  %v4602_v19 = vadd.f32 1.0, %v4042_v30  ;;  %v3757_v55 = vld [vmem:[#allocation8 + $0x84] sm:$0xf0] }
  0xdb   :  { %2340 = vmatpush.bf16.msrb.mxu3 %v3587_v32  ;;  %v2727_v32 = vor.u32 %v3775_v10, %v2726_v44  ;;  %v3111_v33 = vor.u32 %v3871_v25, %v3110_v50  ;;  %4043 = vpow2.f32 %v2587_v31  ;;  %v3063_v44 = vor.u32 %v3859_v48, %v3062_v37  ;;  %v3230_v27 = vld [vmem:[#allocation8 + $0x4f0] sm:$0xf]  ;;  %v3901_v25 = vld [vmem:[#allocation8 + $0x504] sm:$0xf0]  ;;  %v3847_v51 = vld [vmem:[#allocation8 + $0x354] sm:$0xf0] }
  0xdc   :  { %2299 = vmatpush.bf16.msrb.mxu0 %v2987_v47  ;;  %v3303_v47 = vor.u32 %v3919_v28, %v3302_v21  ;;  %4045 = vrcp.f32 %v4602_v19  ;;  %v2077_v61 = vpop.f32.mrf.mxu0  ;;  %v3255_v10 = vor.u32 %v3907_v5, %v3254_v4  ;;  %v2655_v50 = vor.u32 %v3757_v55, %v2654_v49  ;;  %v2630_v21 = vld [vmem:[#allocation8 + $0x40] sm:$0xf]  ;;  %v3895_v6 = vld [vmem:[#allocation8 + $0x4d4] sm:$0xf0]  ;;  %v3793_v36 = vld [vmem:[#allocation8 + $0x1a4] sm:$0xf0] }
  0xdd   :  { %2313 = vmatpush.bf16.msrb.mxu1 %v3179_v11  ;;  %v3278_v11 = vld [vmem:[#allocation8 + $0x550] sm:$0xf]  ;;  %vm239_vm0 = vweird.f32 %v4602_v19  ;;  %v243_v30 = vand.u32 2147483647, %v4602_v19  ;;  %v3841_v37 = vld [vmem:[#allocation8 + $0x324] sm:$0xf0]  ;;  %v3207_v5 = vor.u32 %v3895_v6, %v3206_v52  ;;  %v2799_v34 = vor.u32 %v3793_v36, %v2798_v12 }
  0xde   :  { %2327 = vmatpush.bf16.msrb.mxu2 %v3371_v53  ;;  %v3913_v53 = vld [vmem:[#allocation8 + $0x564] sm:$0xf0]  ;;  %v3182_v48 = vld [vmem:[#allocation8 + $0x490] sm:$0xf]  ;;  %v3979_v49 = vld [vmem:[#allocation8 + $0x774] sm:$0xf0] }
  0xdf   :  { %2341 = vmatpush.bf16.msrb.mxu3 %v3563_v13  ;;  %2300 = vmatmul.bf16.vlgmr.msrb.gmra.mxu0 %v4393_v39  ;;  %v2091_v13 = vpop.f32.mrf.mxu1  ;;  %vm4626_vm3 = vcmp.eq.f32.partialorder %v243_v30, 8.507059e+37  ;;  %v3734_v55 = vld [vmem:[#allocation8 + $0x8e0] sm:$0xf]  ;;  %v2752_v52 = vld [vmem:[#allocation8 + $0x148] sm:$0xf0] }
  0xe0   :  { %2348 = vmatpush.bf16.msra.mxu0 %v2775_v16  ;;  %2314 = vmatmul.bf16.vlgmr.msrb.gmra.mxu1 %v4396_v40  ;;  %v2078_v16 = vadd.f32 %v2077_v61, %v2064_v54  ;;  %v3799_v54 = vld [vmem:[#allocation8 + $0x1d4] sm:$0xf0]  ;;  %v3686_v12 = vld [vmem:[#allocation8 + $0x880] sm:$0xf] }
  0xe1   :  { %2362 = vmatpush.bf16.msra.mxu1 %v2967_v63  ;;  %2328 = vmatmul.bf16.vlgmr.msrb.gmra.mxu2 %v4559_v15  ;;  %v2870_v63 = vld [vmem:[#allocation8 + $0x220] sm:$0xf]  ;;  %v4044_v7 = vpop.eup %4043 }
  0xe2   :  { %2376 = vmatpush.bf16.msra.mxu2 %v3159_v17  ;;  %2342 = vmatmul.bf16.vlgmr.msrb.gmra.mxu3 %v4562_v24  ;;  %v3279_v17 = vor.u32 %v3913_v53, %v3278_v11  ;;  %v2092_v3 = vadd.f32 %v2091_v13, %v2078_v16  ;;  %v4605_v43 = vpop.eup %4045  ;;  %v2944_v11 = vld [vmem:[#allocation8 + $0x2c8] sm:$0xf0] }
  0xe3   :  { %2390 = vmatpush.bf16.msra.mxu3 %v3351_v38  ;;  %v2065_v38 = vpop.f32.mrf.mxu3  ;;  %v235_v2 = vmul.f32 %v4605_v43, %v4602_v19  ;;  %vm240_vm1 = vweird.f32 %v4605_v43 }
  0xe4   :  { %2349 = vmatpush.bf16.msra.mxu0 %v2751_v1  ;;  %v4607_v1 = vadd.f32 1.0, %v4044_v7  ;;  %v2066_v8 = vadd.f32 %v2065_v38, %v2052_v57  ;;  %4047 = vtanh.f32 %v2092_v3  ;;  %v2079_v31 = vpop.f32.mrf.mxu0  ;;  %vm4621_vm2 = vmor %vm239_vm0, %vm240_vm1  ;;  %v3889_v38 = vld [vmem:[#allocation8 + $0x4a4] sm:$0xf0] }
  0xe5   :  { %2363 = vmatpush.bf16.msra.mxu1 %v2943_v20  ;;  %v2871_v20 = vor.u32 %v3811_v18, %v2870_v63  ;;  %v236_v28 = vsub.f32 1.0, %v235_v2  ;;  %v3015_v18 = vor.u32 %v3847_v51, %v3014_v41  ;;  %v4021_v41 = vld [vmem:[#allocation8 + $0x8c4] sm:$0xf0]  ;;  %v3778_v51 = vld [vmem:[#allocation8 + $0x134] sm:$0xf] }
  0xe6   :  { %2377 = vmatpush.bf16.msra.mxu2 %v3135_v58  ;;  %v3805_v58 = vld [vmem:[#allocation8 + $0x204] sm:$0xf0]  ;;  %4049 = vrcp.f32 %v4607_v1  ;;  %v2080_v26 = vadd.f32 %v2079_v31, %v2066_v8  ;;  %vm254_vm4 = vweird.f32 %v4607_v1  ;;  %v4027_v8 = vld [vmem:[#allocation8 + $0x8f4] sm:$0xf0]  ;;  %v2105_v22 = vpop.f32.mrf.mxu2  ;;  %v561_v31 = vperm.slane %v4580_v0, 1 }
  0xe7   :  { %2391 = vmatpush.bf16.msra.mxu3 %v3327_v45  ;;  %v245_v45 = vand.u32 2147483648, %v4602_v19  ;;  %v2847_v46 = vor.u32 %v3805_v58, %v2846_v9  ;;  %v237_v42 = vmul.f32 %v4605_v43, %v236_v28  ;;  %v2990_v19 = vld [vmem:[#allocation8 + $0x310] sm:$0xf]  ;;  %v3784_v9 = vld [vmem:[#allocation8 + $0x164] sm:$0xf]  ;;  %v3183_v28 = vor.u32 %v3889_v38, %v3182_v48 }
  0xe8   :  { %2350 = vmatpush.bf16.msra.mxu0 %v2727_v32  ;;  %v2093_v32 = vpop.f32.mrf.mxu1  ;;  %v2920_v48 = vld [vmem:[#allocation8 + $0x298] sm:$0xf0] }
  0xe9   :  { %2364 = vmatpush.bf16.msra.mxu1 %v2919_v35  ;;  %v3751_v35 = vld [vmem:[#allocation8 + $0x54] sm:$0xf0]  ;;  %v246_v53 = vor.u32 1.1754944e-38, %v245_v45  ;;  %v2094_v61 = vadd.f32 %v2093_v32, %v2080_v26  ;;  %v238_v16 = vadd.f32 %v4605_v43, %v237_v42  ;;  %v3832_v45 = vld [vmem:[#allocation8 + $0x2e4] sm:$0xf] }
  0xea   :  { %2378 = vmatpush.bf16.msra.mxu2 %v3111_v33  ;;  %v2822_v33 = vld [vmem:[#allocation8 + $0x1c0] sm:$0xf]  ;;  %v4048_v13 = vpop.eup %4047  ;;  %v2631_v57 = vor.u32 %v3751_v35, %v2630_v21  ;;  %v3518_v32 = vld [vmem:[#allocation8 + $0x730] sm:$0xf]  ;;  %v3973_v35 = vld [vmem:[#allocation8 + $0x744] sm:$0xf0] }
  0xeb   :  { %2392 = vmatpush.bf16.msra.mxu3 %v3303_v47  ;;  %v3231_v47 = vor.u32 %v3901_v25, %v3230_v27  ;;  %v242_v4 = vsel %vm4621_vm2, %v4605_v43, %v238_v16  ;;  %4051 = vtanh.f32 %v2094_v61  ;;  %v258_v43 = vand.u32 2147483647, %v4607_v1  ;;  %v2119_v25 = vpop.f32.mrf.mxu3  ;;  %v4003_v26 = vld [vmem:[#allocation8 + $0x834] sm:$0xf0] }
  0xec   :  { %2351 = vmatpush.bf16.msra.mxu0 %v2703_v62  ;;  %v2606_v62 = vld [vmem:[#allocation8 + $0x10] sm:$0xf]  ;;  %v4630_v63 = vpop.eup %4049  ;;  %v2991_v27 = vor.u32 %v3841_v37, %v2990_v19  ;;  %v2106_v61 = vadd.f32 %v2105_v22, %v561_v31  ;;  %v2755_v16 = vor.u32 %v3778_v51, %v2752_v52  ;;  %v3820_v37 = vld [vmem:[#allocation8 + $0x284] sm:$0xf]  ;;  %v2896_v22 = vld [vmem:[#allocation8 + $0x268] sm:$0xf0] }
  0xed   :  { %2365 = vmatpush.bf16.msra.mxu1 %v2895_v59  ;;  %v3745_v59 = vld [vmem:[#allocation8 + $0x24] sm:$0xf0]  ;;  %v250_v3 = vmul.f32 %v4630_v63, %v4607_v1  ;;  %vm255_vm5 = vweird.f32 %v4630_v63  ;;  %vm259_vm7 = vcmp.eq.f32.partialorder %v258_v43, 8.507059e+37  ;;  %v2704_v43 = vld [vmem:[#allocation8 + $0xe8] sm:$0xf0] }
  0xee   :  { %2379 = vmatpush.bf16.msra.mxu2 %v3087_v56  ;;  %v2607_v7 = vor.u32 %v3745_v59, %v2606_v62  ;;  %vm4652_vm6 = vmor %vm254_vm4, %vm255_vm5  ;;  %v3519_v62 = vor.u32 %v3973_v35, %v3518_v32  ;;  %v3494_v56 = vld [vmem:[#allocation8 + $0x700] sm:$0xf]  ;;  %v2120_v38 = vadd.f32 %v2119_v25, %v2106_v61 }
  0xef   :  { %2393 = vmatpush.bf16.msra.mxu3 %v3279_v17  ;;  %v2823_v17 = vor.u32 %v3799_v54, %v2822_v33  ;;  %v251_v58 = vsub.f32 1.0, %v250_v3  ;;  %v3710_v54 = vld [vmem:[#allocation8 + $0x8b0] sm:$0xf]  ;;  %v3638_v32 = vld [vmem:[#allocation8 + $0x820] sm:$0xf] }
  0xf0   :  { %2352 = vmatpush.bf16.msra.mxu0 %v2679_v23  ;;  %v3542_v23 = vld [vmem:[#allocation8 + $0x760] sm:$0xf] }
  0xf1   :  { %2366 = vmatpush.bf16.msra.mxu1 %v2871_v20  ;;  %v260_v20 = vand.u32 2147483648, %v4607_v1  ;;  %v252_v21 = vmul.f32 %v4630_v63, %v251_v58  ;;  %v3543_v30 = vor.u32 %v3979_v49, %v3542_v23  ;;  %v4052_v6 = vpop.eup %4051  ;;  %v3826_v1 = vld [vmem:[#allocation8 + $0x2b4] sm:$0xf]  ;;  %v3470_v49 = vld [vmem:[#allocation8 + $0x6d0] sm:$0xf] }
  0xf2   :  { %2380 = vmatpush.bf16.msra.mxu2 %v3063_v44  ;;  %v4641_v44 = vsel %vm4626_vm3, %v246_v53, %v242_v4  ;;  %v2947_v19 = vor.u32 %v3826_v1, %v2944_v11  ;;  %v2107_v4 = vpop.f32.mrf.mxu2  ;;  %v3766_v58 = vld [vmem:[#allocation8 + $0xd4] sm:$0xf]  ;;  %v3614_v1 = vld [vmem:[#allocation8 + $0x7f0] sm:$0xf]  ;;  %v3997_v11 = vld [vmem:[#allocation8 + $0x804] sm:$0xf0] }
  0xf3   :  { %2394 = vmatpush.bf16.msra.mxu3 %v3255_v10  ;;  %v2540_v2 = vmul.f32 %v4048_v13, %v4641_v44  ;;  %v2776_v10 = vld [vmem:[#allocation8 + $0x178] sm:$0xf0]  ;;  %v253_v42 = vadd.f32 %v4630_v63, %v252_v21  ;;  %v3711_v13 = vor.u32 %v4021_v41, %v3710_v54  ;;  %v2121_v23 = vpop.f32.mrf.mxu3  ;;  %v2707_v21 = vor.u32 %v3766_v58, %v2704_v43  ;;  %v3808_v54 = vld [vmem:[#allocation8 + $0x224] sm:$0xf]  ;;  %v3937_v58 = vld [vmem:[#allocation8 + $0x624] sm:$0xf0] }
  0xf4   :  { %2353 = vmatpush.bf16.msra.mxu0 %v2655_v50  ;;  %v2968_v50 = vld [vmem:[#allocation8 + $0x2f8] sm:$0xf0]  ;;  %v2779_v33 = vor.u32 %v3784_v9, %v2776_v10  ;;  %v4009_v9 = vld [vmem:[#allocation8 + $0x864] sm:$0xf0]  ;;  %v3814_v10 = vld [vmem:[#allocation8 + $0x254] sm:$0xf] }
  0xf5   :  { %2367 = vmatpush.bf16.msra.mxu1 %v2847_v46  ;;  %2552 = vst [vmem:[#allocation14 + $0x30] sm:$0xff] %v2540_v2  ;;  %v261_v46 = vor.u32 1.1754944e-38, %v260_v20  ;;  %v257_v53 = vsel %vm4652_vm6, %v4630_v63, %v253_v42  ;;  %v4015_v63 = vld [vmem:[#allocation8 + $0x894] sm:$0xf0]  ;;  %v3662_v20 = vld [vmem:[#allocation8 + $0x850] sm:$0xf]  ;;  %v2899_v35 = vor.u32 %v3814_v10, %v2896_v22 }
  0xf6   :  { %2381 = vmatpush.bf16.msra.mxu2 %v3039_v29  ;;  %v3735_v29 = vor.u32 %v4027_v8, %v3734_v55  ;;  %v3961_v55 = vld [vmem:[#allocation8 + $0x6e4] sm:$0xf0]  ;;  %v2923_v8 = vor.u32 %v3820_v37, %v2920_v48  ;;  %v3663_v25 = vor.u32 %v4009_v9, %v3662_v20  ;;  %v2872_v41 = vld [vmem:[#allocation8 + $0x238] sm:$0xf0]  ;;  %v3398_v48 = vld [vmem:[#allocation8 + $0x640] sm:$0xf] }
  0xf7   :  { %2395 = vmatpush.bf16.msra.mxu3 %v3231_v47  ;;  %v2971_v47 = vor.u32 %v3832_v45, %v2968_v50  ;;  %v4662_v59 = vsel %vm259_vm7, %v261_v46, %v257_v53  ;;  %v2108_v50 = vadd.f32 %v2107_v4, %v561_v31  ;;  %v3760_v46 = vld [vmem:[#allocation8 + $0xa4] sm:$0xf]  ;;  %v3639_v31 = vor.u32 %v4003_v26, %v3638_v32  ;;  %v2824_v20 = vld [vmem:[#allocation8 + $0x1d8] sm:$0xf0]  ;;  %v3374_v9 = vld [vmem:[#allocation8 + $0x610] sm:$0xf] }
  0xf8   :  { %2354 = vmatpush.bf16.msra.mxu0 %v2631_v57  ;;  %v3967_v57 = vld [vmem:[#allocation8 + $0x714] sm:$0xf0]  ;;  %v2546_v36 = vmul.f32 %v4052_v6, %v4662_v59  ;;  %v3949_v6 = vld [vmem:[#allocation8 + $0x684] sm:$0xf0]  ;;  %v2875_v53 = vor.u32 %v3808_v54, %v2872_v41  ;;  %v3566_v22 = vld [vmem:[#allocation8 + $0x790] sm:$0xf] }
  0xf9   :  { %2368 = vmatpush.bf16.msra.mxu1 %v2823_v17  ;;  %v3772_v17 = vld [vmem:[#allocation8 + $0x104] sm:$0xf]  ;;  %v3495_v3 = vor.u32 %v3967_v57, %v3494_v56  ;;  %v2122_v51 = vadd.f32 %v2121_v23, %v2108_v50  ;;  %v3160_v26 = vld [vmem:[#allocation8 + $0x478] sm:$0xf0] }
  0xfa   :  { %2382 = vmatpush.bf16.msra.mxu2 %v3015_v18  ;;  %v2728_v18 = vld [vmem:[#allocation8 + $0x118] sm:$0xf0]  ;;  %2558 = vst [vmem:[#allocation14 + $0x90] sm:$0xff] %v2546_v36  ;;  %v2848_v36 = vld [vmem:[#allocation8 + $0x208] sm:$0xf0] }
  0xfb   :  { %2396 = vmatpush.bf16.msra.mxu3 %v3207_v5  ;;  %v3687_v5 = vor.u32 %v4015_v63, %v3686_v12  ;;  %v3802_v12 = vld [vmem:[#allocation8 + $0x1f4] sm:$0xf]  ;;  %v3615_v63 = vor.u32 %v3997_v11, %v3614_v1  ;;  %v3748_v23 = vld [vmem:[#allocation8 + $0x44] sm:$0xf]  ;;  %v3544_v41 = vld [vmem:[#allocation8 + $0x778] sm:$0xf0] }
  0xfc   :  { %2355 = vmatpush.bf16.msra.mxu0 %v2607_v7  ;;  %v2731_v7 = vor.u32 %v3772_v17, %v2728_v18  ;;  %v2133_v2 = vpop.f32.mrf.mxu0  ;;  %v2851_v4 = vor.u32 %v3802_v12, %v2848_v36  ;;  %v3976_v54 = vld [vmem:[#allocation8 + $0x764] sm:$0xf]  ;;  %v3970_v36 = vld [vmem:[#allocation8 + $0x734] sm:$0xf] }
  0xfd   :  { %2369 = vmatpush.bf16.msra.mxu1 %v2799_v34  ;;  %v2134_v34 = vadd.f32 %v2133_v2, %v2120_v38  ;;  %v2147_v45 = vpop.f32.mrf.mxu1  ;;  %v3943_v38 = vld [vmem:[#allocation8 + $0x654] sm:$0xf0] }
  0xfe   :  { %2383 = vmatpush.bf16.msra.mxu2 %v2991_v27  ;;  %v3471_v27 = vor.u32 %v3961_v55, %v3470_v49  ;;  %v2632_v49 = vld [vmem:[#allocation8 + $0x58] sm:$0xf0]  ;;  %v3796_v55 = vld [vmem:[#allocation8 + $0x1c4] sm:$0xf] }
  0xff   :  { %2397 = vmatpush.bf16.msra.mxu3 %v3183_v28  ;;  %2356 = vmatmul.bf16.vlgmr.msra.gmra.mxu0 %v4329_v60  ;;  %v3446_v28 = vld [vmem:[#allocation8 + $0x6a0] sm:$0xf]  ;;  %v2635_v10 = vor.u32 %v3748_v23, %v2632_v49  ;;  %v3964_v23 = vld [vmem:[#allocation8 + $0x704] sm:$0xf]  ;;  %v3496_v49 = vld [vmem:[#allocation8 + $0x718] sm:$0xf0] }
 0x100   :  { %2404 = vmatpush.bf16.msrb.mxu0 %v3543_v30  ;;  %2370 = vmatmul.bf16.vlgmr.msra.gmra.mxu1 %v4353_v14  ;;  %v3955_v30 = vld [vmem:[#allocation8 + $0x6b4] sm:$0xf0] }
 0x101   :  { %2418 = vmatpush.bf16.msrb.mxu1 %v3735_v29  ;;  %2384 = vmatmul.bf16.vlgmr.msra.gmra.mxu2 %v4393_v39  ;;  %v2680_v29 = vld [vmem:[#allocation8 + $0xb8] sm:$0xf0]  ;;  %v3447_v42 = vor.u32 %v3955_v30, %v3446_v28  ;;  %v2800_v28 = vld [vmem:[#allocation8 + $0x1a8] sm:$0xf0] }
 0x102   :  { %2432 = vmatpush.bf16.msrb.mxu2 %v2779_v33  ;;  %2398 = vmatmul.bf16.vlgmr.msra.gmra.mxu3 %v4396_v40  ;;  %v2148_v33 = vadd.f32 %v2147_v45, %v2134_v34  ;;  %v2683_v52 = vor.u32 %v3760_v46, %v2680_v29  ;;  %v3985_v34 = vld [vmem:[#allocation8 + $0x7a4] sm:$0xf0]  ;;  %v2827_v45 = vor.u32 %v3796_v55, %v2824_v20  ;;  %v3928_v46 = vld [vmem:[#allocation8 + $0x5e4] sm:$0xf] }
 0x103   :  { %2446 = vmatpush.bf16.msrb.mxu3 %v2971_v47  ;;  %v3422_v47 = vld [vmem:[#allocation8 + $0x670] sm:$0xf]  ;;  %v3375_v29 = vor.u32 %v3937_v58, %v3374_v9  ;;  %v4012_v20 = vld [vmem:[#allocation8 + $0x884] sm:$0xf] }
 0x104   :  { %2405 = vmatpush.bf16.msrb.mxu0 %v3519_v62  ;;  %v2161_v61 = vpop.f32.mrf.mxu2  ;;  %v3754_v62 = vld [vmem:[#allocation8 + $0x74] sm:$0xf]  ;;  %v2135_v56 = vpop.f32.mrf.mxu0 }
 0x105   :  { %2419 = vmatpush.bf16.msrb.mxu1 %v3711_v13  ;;  %v2656_v13 = vld [vmem:[#allocation8 + $0x88] sm:$0xf0]  ;;  %v2175_v57 = vpop.f32.mrf.mxu3  ;;  %v2136_v17 = vadd.f32 %v2135_v56, %v2122_v51  ;;  %v3567_v51 = vor.u32 %v3985_v34, %v3566_v22  ;;  %v3922_v56 = vld [vmem:[#allocation8 + $0x5b4] sm:$0xf] }
 0x106   :  { %2433 = vmatpush.bf16.msrb.mxu2 %v2755_v16  ;;  %v2162_v16 = vadd.f32 %v2161_v61, %v2148_v33  ;;  %v2659_v37 = vor.u32 %v3754_v62, %v2656_v13  ;;  %v3352_v33 = vld [vmem:[#allocation8 + $0x5f8] sm:$0xf0]  ;;  %v3874_v61 = vld [vmem:[#allocation8 + $0x434] sm:$0xf]  ;;  %v3547_v13 = vor.u32 %v3976_v54, %v3544_v41  ;;  %v3088_v22 = vld [vmem:[#allocation8 + $0x3e8] sm:$0xf0] }
 0x107   :  { %2447 = vmatpush.bf16.msrb.mxu3 %v2947_v19  ;;  %v3423_v19 = vor.u32 %v3949_v6, %v3422_v47  ;;  %v3736_v6 = vld [vmem:[#allocation8 + $0x8f8] sm:$0xf0]  ;;  %v3355_v62 = vor.u32 %v3928_v46, %v3352_v33  ;;  %v3910_v34 = vld [vmem:[#allocation8 + $0x554] sm:$0xf]  ;;  %v3952_v33 = vld [vmem:[#allocation8 + $0x6a4] sm:$0xf] }
 0x108   :  { %2406 = vmatpush.bf16.msrb.mxu0 %v3495_v3  ;;  %v2176_v18 = vadd.f32 %v2175_v57, %v2162_v16  ;;  %v3590_v3 = vld [vmem:[#allocation8 + $0x7c0] sm:$0xf]  ;;  %v3136_v16 = vld [vmem:[#allocation8 + $0x448] sm:$0xf0]  ;;  %v3448_v54 = vld [vmem:[#allocation8 + $0x6b8] sm:$0xf0] }
 0x109   :  { %2420 = vmatpush.bf16.msrb.mxu1 %v3687_v5  ;;  %v2149_v5 = vpop.f32.mrf.mxu1  ;;  %v3328_v57 = vld [vmem:[#allocation8 + $0x5c8] sm:$0xf0]  ;;  %v4000_v41 = vld [vmem:[#allocation8 + $0x824] sm:$0xf] }
 0x10a   :  { %2434 = vmatpush.bf16.msrb.mxu2 %v2731_v7  ;;  %v3991_v7 = vld [vmem:[#allocation8 + $0x7d4] sm:$0xf0]  ;;  %4053 = vtanh.f32 %v2176_v18  ;;  %v2150_v43 = vadd.f32 %v2149_v5, %v2136_v17  ;;  %v3712_v17 = vld [vmem:[#allocation8 + $0x8c8] sm:$0xf0]  ;;  %v3139_v18 = vor.u32 %v3874_v61, %v3136_v16  ;;  %v3946_v61 = vld [vmem:[#allocation8 + $0x674] sm:$0xf] }
 0x10b   :  { %2448 = vmatpush.bf16.msrb.mxu3 %v2923_v8  ;;  %v3399_v8 = vor.u32 %v3943_v38, %v3398_v48  ;;  %v3591_v2 = vor.u32 %v3991_v7, %v3590_v3  ;;  %v3868_v38 = vld [vmem:[#allocation8 + $0x404] sm:$0xf]  ;;  %v3112_v3 = vld [vmem:[#allocation8 + $0x418] sm:$0xf0]  ;;  %v3616_v16 = vld [vmem:[#allocation8 + $0x808] sm:$0xf0] }
 0x10c   :  { %2407 = vmatpush.bf16.msrb.mxu0 %v3471_v27  ;;  %v3742_v27 = vld [vmem:[#allocation8 + $0x14] sm:$0xf]  ;;  %v2163_v50 = vpop.f32.mrf.mxu2  ;;  %v3304_v7 = vld [vmem:[#allocation8 + $0x598] sm:$0xf0]  ;;  %v3115_v58 = vor.u32 %v3868_v38, %v3112_v3  ;;  %v3940_v38 = vld [vmem:[#allocation8 + $0x644] sm:$0xf] }
 0x10d   :  { %2421 = vmatpush.bf16.msrb.mxu1 %v3663_v25  ;;  %v2608_v25 = vld [vmem:[#allocation8 + $0x28] sm:$0xf0]  ;;  %v2164_v30 = vadd.f32 %v2163_v50, %v2150_v43  ;;  %v2177_v32 = vpop.f32.mrf.mxu3  ;;  %v3862_v43 = vld [vmem:[#allocation8 + $0x3d4] sm:$0xf]  ;;  %v3400_v3 = vld [vmem:[#allocation8 + $0x658] sm:$0xf0] }
 0x10e   :  { %2435 = vmatpush.bf16.msrb.mxu2 %v2707_v21  ;;  %v3790_v21 = vld [vmem:[#allocation8 + $0x194] sm:$0xf]  ;;  %v3472_v50 = vld [vmem:[#allocation8 + $0x6e8] sm:$0xf0] }
 0x10f   :  { %2449 = vmatpush.bf16.msrb.mxu3 %v2899_v35  ;;  %v3880_v35 = vld [vmem:[#allocation8 + $0x464] sm:$0xf]  ;;  %v2178_v47 = vadd.f32 %v2177_v32, %v2164_v30  ;;  %v2803_v11 = vor.u32 %v3790_v21, %v2800_v28  ;;  %v3664_v21 = vld [vmem:[#allocation8 + $0x868] sm:$0xf0]  ;;  %v3091_v28 = vor.u32 %v3862_v43, %v3088_v22  ;;  %v3982_v22 = vld [vmem:[#allocation8 + $0x794] sm:$0xf] }
 0x110   :  { %2408 = vmatpush.bf16.msrb.mxu0 %v3447_v42  ;;  %v4054_v42 = vpop.eup %4053  ;;  %v3856_v32 = vld [vmem:[#allocation8 + $0x3a4] sm:$0xf]  ;;  %v3184_v43 = vld [vmem:[#allocation8 + $0x4a8] sm:$0xf0] }
 0x111   :  { %2422 = vmatpush.bf16.msrb.mxu1 %v3639_v31  ;;  %v2611_v31 = vor.u32 %v3742_v27, %v2608_v25  ;;  %v2541_v1 = vmul.f32 %v4054_v42, %v4641_v44  ;;  %4055 = vtanh.f32 %v2178_v47  ;;  %v3280_v27 = vld [vmem:[#allocation8 + $0x568] sm:$0xf0]  ;;  %v4006_v25 = vld [vmem:[#allocation8 + $0x854] sm:$0xf]  ;;  %v3640_v42 = vld [vmem:[#allocation8 + $0x838] sm:$0xf0] }
 0x112   :  { %2436 = vmatpush.bf16.msrb.mxu2 %v2683_v52  ;;  %v4024_v52 = vld [vmem:[#allocation8 + $0x8e4] sm:$0xf]  ;;  %v3667_v46 = vor.u32 %v4006_v25, %v3664_v21 }
 0x113   :  { %2450 = vmatpush.bf16.msrb.mxu3 %v2875_v53  ;;  %v3163_v53 = vor.u32 %v3880_v35, %v3160_v26  ;;  %2553 = vst [vmem:[#allocation14 + $0x38] sm:$0xff] %v2541_v1  ;;  %v3739_v12 = vor.u32 %v4024_v52, %v3736_v6  ;;  %v3064_v35 = vld [vmem:[#allocation8 + $0x3b8] sm:$0xf0]  ;;  %v3904_v26 = vld [vmem:[#allocation8 + $0x524] sm:$0xf] }
 0x114   :  { %2409 = vmatpush.bf16.msrb.mxu0 %v3423_v19  ;;  %v3520_v19 = vld [vmem:[#allocation8 + $0x748] sm:$0xf0]  ;;  %v3067_v47 = vor.u32 %v3856_v32, %v3064_v35  ;;  %v3850_v52 = vld [vmem:[#allocation8 + $0x374] sm:$0xf] }
 0x115   :  { %2423 = vmatpush.bf16.msrb.mxu1 %v3615_v63  ;;  %v4018_v63 = vld [vmem:[#allocation8 + $0x8b4] sm:$0xf]  ;;  %v3523_v48 = vor.u32 %v3970_v36, %v3520_v19  ;;  %v3040_v6 = vld [vmem:[#allocation8 + $0x388] sm:$0xf0] }
 0x116   :  { %2437 = vmatpush.bf16.msrb.mxu2 %v2659_v37  ;;  %v3331_v37 = vor.u32 %v3922_v56, %v3328_v57  ;;  %v3715_v5 = vor.u32 %v4018_v63, %v3712_v17  ;;  %v3898_v1 = vld [vmem:[#allocation8 + $0x4f4] sm:$0xf]  ;;  %v3043_v56 = vor.u32 %v3850_v52, %v3040_v6  ;;  %v562_v57 = vperm.slane %v4580_v0, 2  ;;  %v3844_v63 = vld [vmem:[#allocation8 + $0x344] sm:$0xf] }
 0x117   :  { %2451 = vmatpush.bf16.msrb.mxu3 %v2851_v4  ;;  %v3916_v4 = vld [vmem:[#allocation8 + $0x584] sm:$0xf]  ;;  %v4056_v55 = vpop.eup %4055  ;;  %v3016_v17 = vld [vmem:[#allocation8 + $0x358] sm:$0xf0] }
 0x118   :  { %2410 = vmatpush.bf16.msrb.mxu0 %v3399_v8  ;;  %v3688_v8 = vld [vmem:[#allocation8 + $0x898] sm:$0xf0]  ;;  %v2547_v9 = vmul.f32 %v4056_v55, %v4662_v59  ;;  %v3838_v55 = vld [vmem:[#allocation8 + $0x314] sm:$0xf] }
 0x119   :  { %2424 = vmatpush.bf16.msrb.mxu1 %v3591_v2  ;;  %v3307_v2 = vor.u32 %v3916_v4, %v3304_v7  ;;  %v3592_v7 = vld [vmem:[#allocation8 + $0x7d8] sm:$0xf0] }
 0x11a   :  { %2438 = vmatpush.bf16.msrb.mxu2 %v2635_v10  ;;  %v3499_v10 = vor.u32 %v3964_v23, %v3496_v49  ;;  %2559 = vst [vmem:[#allocation14 + $0x98] sm:$0xff] %v2547_v9  ;;  %v3019_v23 = vor.u32 %v3844_v63, %v3016_v17  ;;  %v3403_v49 = vor.u32 %v3940_v38, %v3400_v3 }
 0x11b   :  { %2452 = vmatpush.bf16.msrb.mxu3 %v2827_v45  ;;  %v3691_v45 = vor.u32 %v4012_v20, %v3688_v8  ;;  %v2992_v20 = vld [vmem:[#allocation8 + $0x328] sm:$0xf0]  ;;  %v3886_v8 = vld [vmem:[#allocation8 + $0x494] sm:$0xf] }
 0x11c   :  { %2411 = vmatpush.bf16.msrb.mxu0 %v3375_v29  ;;  %v3256_v29 = vld [vmem:[#allocation8 + $0x538] sm:$0xf0]  ;;  %v2189_v19 = vpop.f32.mrf.mxu0 }
 0x11d   :  { %2425 = vmatpush.bf16.msrb.mxu1 %v3567_v51  ;;  %v3259_v51 = vor.u32 %v3904_v26, %v3256_v29  ;;  %v2203_v4 = vpop.f32.mrf.mxu1  ;;  %v2190_v9 = vadd.f32 %v2189_v19, %v562_v57 }
 0x11e   :  { %2439 = vmatpush.bf16.msrb.mxu2 %v2611_v31  ;;  %v3451_v31 = vor.u32 %v3952_v33, %v3448_v54 }
 0x11f   :  { %2453 = vmatpush.bf16.msrb.mxu3 %v2803_v11  ;;  %2412 = vmatmul.bf16.vlgmr.msrb.gmra.mxu0 %v4559_v15  ;;  %v3643_v11 = vor.u32 %v4000_v41, %v3640_v42  ;;  %v2204_v25 = vadd.f32 %v2203_v4, %v2190_v9 }
 0x120   :  { %2460 = vmatpush.bf16.msra.mxu0 %v3163_v53  ;;  %2426 = vmatmul.bf16.vlgmr.msrb.gmra.mxu1 %v4562_v24  ;;  %v3232_v53 = vld [vmem:[#allocation8 + $0x508] sm:$0xf0] }
 0x121   :  { %2474 = vmatpush.bf16.msra.mxu1 %v3355_v62  ;;  %2440 = vmatmul.bf16.vlgmr.msrb.gmra.mxu2 %v4329_v60  ;;  %v3958_v60 = vld [vmem:[#allocation8 + $0x6d4] sm:$0xf]  ;;  %v3424_v62 = vld [vmem:[#allocation8 + $0x688] sm:$0xf0] }
 0x122   :  { %2488 = vmatpush.bf16.msra.mxu2 %v3547_v13  ;;  %2454 = vmatmul.bf16.vlgmr.msrb.gmra.mxu3 %v4353_v14  ;;  %v3283_v14 = vor.u32 %v3910_v34, %v3280_v27  ;;  %v3475_v30 = vor.u32 %v3958_v60, %v3472_v50  ;;  %v3994_v13 = vld [vmem:[#allocation8 + $0x7f4] sm:$0xf]  ;;  %v3427_v36 = vor.u32 %v3946_v61, %v3424_v62  ;;  %v3568_v34 = vld [vmem:[#allocation8 + $0x7a8] sm:$0xf0]  ;;  %v4683_v61 = vld [vmem:[#allocation9] sm:$0x3f] }
 0x123   :  { %2502 = vmatpush.bf16.msra.mxu3 %v3739_v12  ;;  %v3235_v12 = vor.u32 %v3898_v1, %v3232_v53  ;;  %v2995_v27 = vor.u32 %v3838_v55, %v2992_v20  ;;  %v3571_v21 = vor.u32 %v3982_v22, %v3568_v34  ;;  %v563_v62 = vperm.slane %v4683_v61, 3 }
 0x124   :  { %2461 = vmatpush.bf16.msra.mxu0 %v3139_v18  ;;  %v3892_v18 = vld [vmem:[#allocation8 + $0x4c4] sm:$0xf]  ;;  %v2217_v50 = vpop.f32.mrf.mxu2  ;;  %v564_v22 = vperm.slane %v4683_v61, 4 }
 0x125   :  { %2475 = vmatpush.bf16.msra.mxu1 %v3331_v37  ;;  %v3619_v37 = vor.u32 %v3994_v13, %v3616_v16  ;;  %v2218_v35 = vadd.f32 %v2217_v50, %v2204_v25 }
 0x126   :  { %2489 = vmatpush.bf16.msra.mxu2 %v3523_v48  ;;  %v3208_v48 = vld [vmem:[#allocation8 + $0x4d8] sm:$0xf0] }
 0x127   :  { %2503 = vmatpush.bf16.msra.mxu3 %v3715_v5  ;;  %v3988_v5 = vld [vmem:[#allocation8 + $0x7c4] sm:$0xf]  ;;  %v3211_v0 = vor.u32 %v3892_v18, %v3208_v48 }
 0x128   :  { %2462 = vmatpush.bf16.msra.mxu0 %v3115_v58  ;;  %v3595_v58 = vor.u32 %v3988_v5, %v3592_v7 }
 0x129   :  { %2476 = vmatpush.bf16.msra.mxu1 %v3307_v2  ;;  %v3934_v2 = vld [vmem:[#allocation8 + $0x614] sm:$0xf] }
 0x12a   :  { %2490 = vmatpush.bf16.msra.mxu2 %v3499_v10  ;;  %v3376_v10 = vld [vmem:[#allocation8 + $0x628] sm:$0xf0] }
 0x12b   :  { %2504 = vmatpush.bf16.msra.mxu3 %v3691_v45  ;;  %v3187_v45 = vor.u32 %v3886_v8, %v3184_v43  ;;  %v3379_v60 = vor.u32 %v3934_v2, %v3376_v10 }
 0x12c   :  { %2463 = vmatpush.bf16.msra.mxu0 %v3091_v28  ;;  %v2191_v28 = vpop.f32.mrf.mxu0  ;;  %v2219_v29 = vpop.f32.mrf.mxu2 }
 0x12d   :  { %2477 = vmatpush.bf16.msra.mxu1 %v3283_v14  ;;  %v2205_v14 = vpop.f32.mrf.mxu1  ;;  %v2192_v32 = vadd.f32 %v2191_v28, %v562_v57 }
 0x12e   :  { %2491 = vmatpush.bf16.msra.mxu2 %v3475_v30  ;;  %v2231_v30 = vpop.f32.mrf.mxu3 }
 0x12f   :  { %2505 = vmatpush.bf16.msra.mxu3 %v3667_v46  ;;  %v2206_v26 = vadd.f32 %v2205_v14, %v2192_v32  ;;  %v2232_v46 = vadd.f32 %v2231_v30, %v2218_v35 }
 0x130   :  { %2464 = vmatpush.bf16.msra.mxu0 %v3067_v47 }
 0x131   :  { %2478 = vmatpush.bf16.msra.mxu1 %v3259_v51  ;;  %v2220_v42 = vadd.f32 %v2219_v29, %v2206_v26 }
 0x132   :  { %2492 = vmatpush.bf16.msra.mxu2 %v3451_v31 }
 0x133   :  { %2506 = vmatpush.bf16.msra.mxu3 %v3643_v11 }
 0x134   :  { %2465 = vmatpush.bf16.msra.mxu0 %v3043_v56 }
 0x135   :  { %2479 = vmatpush.bf16.msra.mxu1 %v3235_v12 }
 0x136   :  { %2493 = vmatpush.bf16.msra.mxu2 %v3427_v36  ;;  %v2233_v47 = vpop.f32.mrf.mxu3 }
 0x137   :  { %2507 = vmatpush.bf16.msra.mxu3 %v3619_v37  ;;  %v2234_v31 = vadd.f32 %v2233_v47, %v2220_v42 }
 0x138   :  { %2466 = vmatpush.bf16.msra.mxu0 %v3019_v23 }
 0x139   :  { %2480 = vmatpush.bf16.msra.mxu1 %v3211_v0 }
 0x13a   :  { %2494 = vmatpush.bf16.msra.mxu2 %v3403_v49 }
 0x13b   :  { %2508 = vmatpush.bf16.msra.mxu3 %v3595_v58 }
 0x13c   :  { %2467 = vmatpush.bf16.msra.mxu0 %v2995_v27  ;;  %v2245_v33 = vpop.f32.mrf.mxu0 }
 0x13d   :  { %2481 = vmatpush.bf16.msra.mxu1 %v3187_v45  ;;  %v2246_v54 = vadd.f32 %v2245_v33, %v2232_v46  ;;  %v2259_v41 = vpop.f32.mrf.mxu1 }
 0x13e   :  { %2495 = vmatpush.bf16.msra.mxu2 %v3379_v60 }
 0x13f   :  { %2509 = vmatpush.bf16.msra.mxu3 %v3571_v21  ;;  %2468 = vmatmul.bf16.vlgmr.msra.gmra.mxu0 %v4393_v39  ;;  %v2260_v51 = vadd.f32 %v2259_v41, %v2246_v54 }
 0x140   :  { %2482 = vmatmul.bf16.vlgmr.msra.gmra.mxu1 %v4396_v40 }
 0x141   :  { %2496 = vmatmul.bf16.vlgmr.msra.gmra.mxu2 %v4559_v15  ;;  %4057 = vtanh.f32 %v2260_v51 }
 0x142   :  { %2510 = vmatmul.bf16.vlgmr.msra.gmra.mxu3 %v4562_v24 }
 0x144   :  { %v2247_v52 = vpop.f32.mrf.mxu0  ;;  %v2273_v24 = vpop.f32.mrf.mxu2 }
 0x145   :  { %v2248_v6 = vadd.f32 %v2247_v52, %v2234_v31  ;;  %v2261_v39 = vpop.f32.mrf.mxu1  ;;  %v2287_v11 = vpop.f32.mrf.mxu3  ;;  %v2274_v16 = vadd.f32 %v2273_v24, %v563_v62 }
 0x147   :  { %v4058_v1 = vpop.eup %4057  ;;  %v2262_v40 = vadd.f32 %v2261_v39, %v2248_v6  ;;  %v2288_v56 = vadd.f32 %v2287_v11, %v2274_v16  ;;  %v565_v11 = vperm.slane %v4683_v61, 5 }
 0x148   :  { %v2542_v15 = vmul.f32 %v4058_v1, %v4641_v44 }
 0x149   :  { %4059 = vtanh.f32 %v2262_v40 }
 0x14a   :  { %2554 = vst [vmem:[#allocation14 + $0x40] sm:$0xff] %v2542_v15 }
 0x14c   :  { %v2275_v57 = vpop.f32.mrf.mxu2 }
 0x14d   :  { %v2289_v12 = vpop.f32.mrf.mxu3  ;;  %v2276_v17 = vadd.f32 %v2275_v57, %v563_v62 }
 0x14f   :  { %v4060_v53 = vpop.eup %4059  ;;  %v2290_v37 = vadd.f32 %v2289_v12, %v2276_v17 }
 0x150   :  { %v2548_v13 = vmul.f32 %v4060_v53, %v4662_v59 }
 0x152   :  { %2560 = vst [vmem:[#allocation14 + $0xa0] sm:$0xff] %v2548_v13 }
 0x15c   :  { %v2301_v36 = vpop.f32.mrf.mxu0 }
 0x15d   :  { %v2302_v19 = vadd.f32 %v2301_v36, %v2288_v56  ;;  %v2315_v63 = vpop.f32.mrf.mxu1 }
 0x15f   :  { %v2316_v18 = vadd.f32 %v2315_v63, %v2302_v19 }
 0x164   :  { %v2329_v48 = vpop.f32.mrf.mxu2  ;;  %v2303_v3 = vpop.f32.mrf.mxu0 }
 0x165   :  { %v2330_v38 = vadd.f32 %v2329_v48, %v2316_v18  ;;  %v2343_v4 = vpop.f32.mrf.mxu3  ;;  %v2304_v5 = vadd.f32 %v2303_v3, %v2290_v37  ;;  %v2317_v23 = vpop.f32.mrf.mxu1 }
 0x167   :  { %v2344_v7 = vadd.f32 %v2343_v4, %v2330_v38  ;;  %v2318_v0 = vadd.f32 %v2317_v23, %v2304_v5 }
 0x169   :  { %4061 = vtanh.f32 %v2344_v7 }
 0x16c   :  { %v2331_v49 = vpop.f32.mrf.mxu2 }
 0x16d   :  { %v2332_v55 = vadd.f32 %v2331_v49, %v2318_v0  ;;  %v2345_v20 = vpop.f32.mrf.mxu3 }
 0x16f   :  { %v4062_v8 = vpop.eup %4061  ;;  %v2346_v9 = vadd.f32 %v2345_v20, %v2332_v55 }
 0x170   :  { %v2543_v58 = vmul.f32 %v4062_v8, %v4641_v44 }
 0x171   :  { %4063 = vtanh.f32 %v2346_v9 }
 0x172   :  { %2555 = vst [vmem:[#allocation14 + $0x48] sm:$0xff] %v2543_v58 }
 0x177   :  { %v4064_v43 = vpop.eup %4063 }
 0x178   :  { %v2549_v2 = vmul.f32 %v4064_v43, %v4662_v59 }
 0x17a   :  { %2561 = vst [vmem:[#allocation14 + $0xa8] sm:$0xff] %v2549_v2 }
 0x17c   :  { %v2357_v10 = vpop.f32.mrf.mxu0 }
 0x17d   :  { %v2371_v34 = vpop.f32.mrf.mxu1  ;;  %v2358_v27 = vadd.f32 %v2357_v10, %v564_v22 }
 0x17f   :  { %v2372_v60 = vadd.f32 %v2371_v34, %v2358_v27 }
 0x184   :  { %v2385_v45 = vpop.f32.mrf.mxu2  ;;  %v2359_v50 = vpop.f32.mrf.mxu0 }
 0x185   :  { %v2373_v25 = vpop.f32.mrf.mxu1  ;;  %v2399_v21 = vpop.f32.mrf.mxu3  ;;  %v2360_v28 = vadd.f32 %v2359_v50, %v564_v22  ;;  %v2386_v14 = vadd.f32 %v2385_v45, %v2372_v60 }
 0x187   :  { %v2374_v30 = vadd.f32 %v2373_v25, %v2360_v28  ;;  %v2400_v32 = vadd.f32 %v2399_v21, %v2386_v14 }
 0x18c   :  { %v2387_v35 = vpop.f32.mrf.mxu2 }
 0x18d   :  { %v2388_v33 = vadd.f32 %v2387_v35, %v2374_v30  ;;  %v2401_v54 = vpop.f32.mrf.mxu3 }
 0x18f   :  { %v2402_v42 = vadd.f32 %v2401_v54, %v2388_v33 }
 0x19c   :  { %v2413_v26 = vpop.f32.mrf.mxu0 }
 0x19d   :  { %v2414_v46 = vadd.f32 %v2413_v26, %v2400_v32  ;;  %v2427_v29 = vpop.f32.mrf.mxu1 }
 0x19f   :  { %v2428_v41 = vadd.f32 %v2427_v29, %v2414_v46 }
 0x1a1   :  { %4065 = vtanh.f32 %v2428_v41 }
 0x1a4   :  { %v2415_v47 = vpop.f32.mrf.mxu0  ;;  %v2441_v1 = vpop.f32.mrf.mxu2 }
 0x1a5   :  { %v2416_v51 = vadd.f32 %v2415_v47, %v2402_v42  ;;  %v2429_v31 = vpop.f32.mrf.mxu1  ;;  %v2455_v15 = vpop.f32.mrf.mxu3  ;;  %v2442_v53 = vadd.f32 %v2441_v1, %v565_v11 }
 0x1a7   :  { %v4066_v52 = vpop.eup %4065  ;;  %v2430_v6 = vadd.f32 %v2429_v31, %v2416_v51  ;;  %v2456_v13 = vadd.f32 %v2455_v15, %v2442_v53 }
 0x1a8   :  { %v2544_v39 = vmul.f32 %v4066_v52, %v4641_v44 }
 0x1a9   :  { %4067 = vtanh.f32 %v2430_v6 }
 0x1aa   :  { %2556 = vst [vmem:[#allocation14 + $0x50] sm:$0xff] %v2544_v39 }
 0x1ac   :  { %v2443_v62 = vpop.f32.mrf.mxu2 }
 0x1ad   :  { %v2457_v16 = vpop.f32.mrf.mxu3  ;;  %v2444_v36 = vadd.f32 %v2443_v62, %v565_v11 }
 0x1af   :  { %v4068_v40 = vpop.eup %4067  ;;  %v2458_v17 = vadd.f32 %v2457_v16, %v2444_v36 }
 0x1b0   :  { %v2550_v24 = vmul.f32 %v4068_v40, %v4662_v59 }
 0x1b2   :  { %2562 = vst [vmem:[#allocation14 + $0xb0] sm:$0xff] %v2550_v24 }
 0x1bc   :  { %v2469_v56 = vpop.f32.mrf.mxu0 }
 0x1bd   :  { %v2470_v57 = vadd.f32 %v2469_v56, %v2456_v13  ;;  %v2483_v12 = vpop.f32.mrf.mxu1 }
 0x1bf   :  { %v2484_v19 = vadd.f32 %v2483_v12, %v2470_v57 }
 0x1c4   :  { %v2497_v63 = vpop.f32.mrf.mxu2  ;;  %v2471_v48 = vpop.f32.mrf.mxu0 }
 0x1c5   :  { %v2498_v18 = vadd.f32 %v2497_v63, %v2484_v19  ;;  %v2511_v37 = vpop.f32.mrf.mxu3  ;;  %v2472_v3 = vadd.f32 %v2471_v48, %v2458_v17  ;;  %v2485_v4 = vpop.f32.mrf.mxu1 }
 0x1c7   :  { %v2512_v38 = vadd.f32 %v2511_v37, %v2498_v18  ;;  %v2486_v61 = vadd.f32 %v2485_v4, %v2472_v3 }
 0x1c9   :  { %4069 = vtanh.f32 %v2512_v38 }
 0x1cc   :  { %v2499_v5 = vpop.f32.mrf.mxu2 }
 0x1cd   :  { %v2500_v7 = vadd.f32 %v2499_v5, %v2486_v61  ;;  %v2513_v23 = vpop.f32.mrf.mxu3 }
 0x1cf   :  { %v4070_v0 = vpop.eup %4069  ;;  %v2514_v49 = vadd.f32 %v2513_v23, %v2500_v7 }
 0x1d0   :  { %v2545_v55 = vmul.f32 %v4070_v0, %v4641_v44 }
 0x1d1   :  { %4071 = vtanh.f32 %v2514_v49 }
 0x1d2   :  { %2557 = vst [vmem:[#allocation14 + $0x58] sm:$0xff] %v2545_v55 }
 0x1d7   :  { %v4072_v20 = vpop.eup %4071 }
 0x1d8   :  { %v2551_v8 = vmul.f32 %v4072_v20, %v4662_v59 }
 0x1da   :  { %2563 = vst [vmem:[#allocation14 + $0xb8] sm:$0xff] %v2551_v8 }
 0x1db   :  { %2576 = dma.vmem_to_hbm [thread:$0]  %s2569_s12, 3072, %s2571_s15, [#allocation5], %s4263_s1, %s4263_s1, %s4264_s16  }
 0x1dc   :  { %4250 = dma.done.wait [#allocation5], 3072  }
 0x1dd   :  { %4251 = vsyncadd [#allocation5], 4294964224 }
 0x1de   :  { %2581 = vsyncpa [#allocation4], 1 }
 0x1df   :  { %2582 = vsyncpa [#allocation7], 1 }
 0x1e0   :  { %2583 = vsyncpa [#allocation10], 1 }
 0x1e1   :  { %2584 = vsyncpa [#allocation13], 1 }
 0x1e2   :  { %2585 = vsyncpa [#allocation5], 1 }

</bundles_post_ra>
